<compile_context>
chip_gen: v6e
topology: v6e:2x2x1
jax: 0.10.0
libtpu: 0.0.40
codegen_flags: <defaults>
</compile_context>

<pallas_src>
import jax
import jax.numpy as jnp
from jax.experimental import pallas as pl
from jax.experimental.pallas import tpu as pltpu

_NEG_LARGE = -1e30  # finite "-inf": keeps all-masked rows NaN-free


def _pool_update(chain, h_ref, m3_ref, w_att, b_att, m_sc, l_sc, acc_sc):
    """Online-softmax attention-pooling update for one chain over one seq tile."""
    h = h_ref[...].astype(jnp.float32)                       # (Bt, St, H) f32
    mask = m3_ref[...][:, :, 0]                              # (Bt, St)

    # Attention logits: Linear(H, 1) == dot with the (H,) attention vector.
    scores = jnp.sum(h * w_att[None, :, :], axis=-1) + b_att  # (Bt, St)
    scores = jnp.where(mask != 0.0, scores, _NEG_LARGE)

    m_prev = m_sc[chain]                                     # (Bt, 1)
    l_prev = l_sc[chain]                                     # (Bt, 1)
    acc_prev = acc_sc[chain]                                 # (Bt, H)

    m_new = jnp.maximum(m_prev, jnp.max(scores, axis=-1, keepdims=True))
    alpha = jnp.exp(m_prev - m_new)                          # (Bt, 1)
    p = jnp.exp(scores - m_new)                              # (Bt, St)

    # Weighted sum over the seq tile on the MXU (flash-style bqk,bkd->bqd, q=1).
    upd = jnp.einsum('bqs,bsh->bqh', p[:, None, :], h,
                     preferred_element_type=jnp.float32)[:, 0, :]   # (Bt, H)

    m_sc[chain] = m_new
    l_sc[chain] = alpha * l_prev + jnp.sum(p, axis=-1, keepdims=True)
    acc_sc[chain] = alpha * acc_prev + upd


def regression_kernel(hh_ref, hm_ref, lh_ref, lm_ref,
                      w_att_ref, w_head_h_ref, w_head_l_ref,
                      b_att_ref, b_head_ref,
                      out_ref, m_sc, l_sc, acc_sc):
    k = pl.program_id(1)
    nk = pl.num_programs(1)

    @pl.when(k == 0)
    def _init():
        m_sc[...] = jnp.full_like(m_sc, _NEG_LARGE)
        l_sc[...] = jnp.zeros_like(l_sc)
        acc_sc[...] = jnp.zeros_like(acc_sc)

    w_att = w_att_ref[...]            # (1, H) f32
    b_att = b_att_ref[0, 0]           # scalar (SMEM)

    _pool_update(0, hh_ref, hm_ref, w_att, b_att, m_sc, l_sc, acc_sc)  # heavy
    _pool_update(1, lh_ref, lm_ref, w_att, b_att, m_sc, l_sc, acc_sc)  # light

    @pl.when(k == nk - 1)
    def _finalize():
        pooled_h = acc_sc[0] * pl.reciprocal(l_sc[0], approx=True)   # (Bt, H)
        pooled_l = acc_sc[1] * pl.reciprocal(l_sc[1], approx=True)   # (Bt, H)
        # SimpleHead: Linear(2H -> 1) with the weight pre-split per chain.
        pred = (jnp.sum(pooled_h * w_head_h_ref[...], axis=-1, keepdims=True)
                + jnp.sum(pooled_l * w_head_l_ref[...], axis=-1, keepdims=True)
                + b_head_ref[0, 0])                                  # (Bt, 1)
        # Lane-dense store: broadcast the prediction across 128 lanes.
        out_ref[...] = jnp.broadcast_to(pred, out_ref.shape)


def _pick_seq_tile(S):
    for st in (512, 256, 128, 64, 32, 16, 8):
        if S % st == 0:
            return st
    return S


def _pick_batch_tile(B):
    return 8 if B % 8 == 0 else B


def regression_forward(heavy_hidden, heavy_mask, light_hidden, light_mask,
                       params, *, seq_tile=None):
    """Attention-pool heavy/light ESM hidden states and apply the SimpleHead."""
    assert heavy_hidden.shape[0] == light_hidden.shape[0]
    assert heavy_hidden.shape[-1] == light_hidden.shape[-1]
    B, S_h, H = heavy_hidden.shape
    S_l = light_hidden.shape[1]

    # bf16 inputs halve HBM traffic for the dominant tensors; kernel upcasts.
    hh = heavy_hidden.astype(jnp.bfloat16)
    lh = light_hidden.astype(jnp.bfloat16)
    hm = heavy_mask.astype(jnp.float32)
    lm = light_mask.astype(jnp.float32)

    # Pad heavy/light to a common seq length (mask=0 positions contribute 0).
    S = max(S_h, S_l)
    if S_h < S:
        hh = jnp.pad(hh, ((0, 0), (0, S - S_h), (0, 0)))
        hm = jnp.pad(hm, ((0, 0), (0, S - S_h)))
    if S_l < S:
        lh = jnp.pad(lh, ((0, 0), (0, S - S_l), (0, 0)))
        lm = jnp.pad(lm, ((0, 0), (0, S - S_l)))

    # Masks as (B, S, 1) so the seq tile lands on the sublane axis.
    hm3 = hm[:, :, None]
    lm3 = lm[:, :, None]

    bt = _pick_batch_tile(B)
    st = _pick_seq_tile(S) if seq_tile is None else seq_tile
    assert S % st == 0 and (st % 8 == 0 or st == S)
    grid = (B // bt, S // st)

    # Pre-split the head weight: no in-kernel slicing / layout risk.
    w_head = params["w_head"]
    w_head_h = w_head[:, :H]
    w_head_l = w_head[:, H:]

    hid_spec = pl.BlockSpec((bt, st, H), lambda i, k: (i, k, 0))
    msk_spec = pl.BlockSpec((bt, st, 1), lambda i, k: (i, k, 0))
    wvec_spec = pl.BlockSpec((1, H), lambda i, k: (0, 0))
    smem_spec = pl.BlockSpec(memory_space=pltpu.MemorySpace.SMEM)

    # VMEM budget: double-buffered bf16 hidden tiles dominate; keep v7x-safe.
    tile_bytes = bt * st * H * 2
    vmem_limit = min(max(32 * 1024 * 1024, 8 * tile_bytes), 56 * 1024 * 1024)

    out = pl.pallas_call(
        regression_kernel,
        out_shape=jax.ShapeDtypeStruct((B, 128), jnp.float32),
        grid=grid,
        in_specs=[hid_spec, msk_spec, hid_spec, msk_spec,
                  wvec_spec, wvec_spec, wvec_spec, smem_spec, smem_spec],
        out_specs=pl.BlockSpec((bt, 128), lambda i, k: (i, 0)),
        scratch_shapes=[
            pltpu.VMEM((2, bt, 1), jnp.float32),   # running max per chain
            pltpu.VMEM((2, bt, 1), jnp.float32),   # running denom per chain
            pltpu.VMEM((2, bt, H), jnp.float32),   # running weighted sum
        ],
        compiler_params=pltpu.CompilerParams(
            dimension_semantics=("parallel", "arbitrary"),
            vmem_limit_bytes=vmem_limit),
    )(hh, hm3, lh, lm3,
      params["w_att"], w_head_h, w_head_l, params["b_att"], params["b_head"])
    return out[:, 0]


def reference_forward(heavy_hidden, heavy_mask, light_hidden, light_mask, params):
    """Pure-JAX reference mirroring the PyTorch forward pass."""
    def pool(h, m):
        s = jnp.einsum('bsh,h->bs', h, params["w_att"][0]) + params["b_att"][0, 0]
        s = jnp.where(m != 0, s, -jnp.inf)
        w = jax.nn.softmax(s, axis=-1)
        return jnp.einsum('bsh,bs->bh', h, w)
    hr = pool(heavy_hidden, heavy_mask)
    lr = pool(light_hidden, light_mask)
    combined = jnp.concatenate([hr, lr], axis=1)
    return combined @ params["w_head"][0] + params["b_head"][0, 0]


def init_params(key, hidden_dim):
    """Deterministic init mimicking nn.Linear shapes (uniform ~ PyTorch default)."""
    k1, k2, k3, k4 = jax.random.split(key, 4)
    bound_att = 1.0 / (hidden_dim ** 0.5)
    bound_head = 1.0 / ((2 * hidden_dim) ** 0.5)
    return {
        # AttentionPooling: nn.Linear(hidden_dim, 1)
        "w_att": jax.random.uniform(k1, (1, hidden_dim), jnp.float32,
                                    -bound_att, bound_att),
        "b_att": jax.random.uniform(k2, (1, 1), jnp.float32,
                                    -bound_att, bound_att),
        # SimpleHead: nn.Linear(2 * hidden_dim, 1)
        "w_head": jax.random.uniform(k3, (1, 2 * hidden_dim), jnp.float32,
                                     -bound_head, bound_head),
        "b_head": jax.random.uniform(k4, (1, 1), jnp.float32,
                                     -bound_head, bound_head),
    }


if __name__ == "__main__":
    B, S_h, S_l, H = 16, 16, 12, 32   # small demo shapes (batch, seq, hidden)

    key = jax.random.PRNGKey(0)
    kh, kl, kp = jax.random.split(key, 3)

    # Synthetic ESM outputs (last_hidden_state) for heavy / light chains.
    heavy_hidden = jax.random.normal(kh, (B, S_h, H), jnp.float32)
    light_hidden = jax.random.normal(kl, (B, S_l, H), jnp.float32)

    # Padding masks with varying valid lengths (1 = real token, 0 = padding).
    heavy_len = 1 + (jnp.arange(B) * 3) % S_h
    light_len = 1 + (jnp.arange(B) * 5 + 2) % S_l
    heavy_mask = (jnp.arange(S_h)[None, :] < heavy_len[:, None]).astype(jnp.float32)
    light_mask = (jnp.arange(S_l)[None, :] < light_len[:, None]).astype(jnp.float32)

    params = init_params(kp, H)

    # seq_tile=8 exercises the multi-tile online-softmax path at these sizes.
    preds = regression_forward(heavy_hidden, heavy_mask,
                               light_hidden, light_mask, params, seq_tile=8)
    preds = jax.block_until_ready(preds)

    # Reference on the same bf16-rounded hidden states the kernel consumes.
    hh_r = heavy_hidden.astype(jnp.bfloat16).astype(jnp.float32)
    lh_r = light_hidden.astype(jnp.bfloat16).astype(jnp.float32)
    ref = reference_forward(hh_r, heavy_mask, lh_r, light_mask, params)

    assert preds.shape == (B,)
    assert jnp.allclose(preds, ref, rtol=1e-2, atol=1e-2), (preds, ref)
    print("KERNEL_OK")
</pallas_src>

<mosaic_0001>
module attributes {stable_mosaic.version = 11 : i64} {
  func.func @regression_kernel(%arg0: i32, %arg1: i32, %arg2: memref<8x8x32xbf16, #tpu.memory_space<vmem>>, %arg3: memref<8x8x1xf32, #tpu.memory_space<vmem>>, %arg4: memref<8x8x32xbf16, #tpu.memory_space<vmem>>, %arg5: memref<8x8x1xf32, #tpu.memory_space<vmem>>, %arg6: memref<1x32xf32, #tpu.memory_space<vmem>>, %arg7: memref<1x32xf32, #tpu.memory_space<vmem>>, %arg8: memref<1x32xf32, #tpu.memory_space<vmem>>, %arg9: memref<1x1xf32, #tpu.memory_space<smem>>, %arg10: memref<1x1xf32, #tpu.memory_space<smem>>, %arg11: memref<8x128xf32, #tpu.memory_space<vmem>>, %arg12: memref<2x8x1xf32, #tpu.memory_space<vmem>>, %arg13: memref<2x8x1xf32, #tpu.memory_space<vmem>>, %arg14: memref<2x8x32xf32, #tpu.memory_space<vmem>>) attributes {dimension_semantics = [#tpu.dimension_semantics<parallel>, #tpu.dimension_semantics<arbitrary>], iteration_bounds = array<i64: 2, 2>, scalar_prefetch = 0 : i64, scratch_operands = 3 : i64, tpu.core_type = #tpu.core_type<tc>, window_params = [{transform_indices = @transform_0, window_bounds = array<i64: 8, 8, 32>}, {transform_indices = @transform_1, window_bounds = array<i64: 8, 8, 1>}, {transform_indices = @transform_2, window_bounds = array<i64: 8, 8, 32>}, {transform_indices = @transform_3, window_bounds = array<i64: 8, 8, 1>}, {pipeline_mode = #tpu.pipeline_mode<synchronous>, transform_indices = @transform_4, window_bounds = array<i64: 1, 32>}, {pipeline_mode = #tpu.pipeline_mode<synchronous>, transform_indices = @transform_5, window_bounds = array<i64: 1, 32>}, {pipeline_mode = #tpu.pipeline_mode<synchronous>, transform_indices = @transform_6, window_bounds = array<i64: 1, 32>}, {transform_indices = @transform_7, window_bounds = array<i64: 1, 1>}, {transform_indices = @transform_8, window_bounds = array<i64: 1, 1>}, {transform_indices = @transform_9, window_bounds = array<i64: 8, 128>}]} {
    %c0_i32 = arith.constant 0 : i32
    %0 = arith.cmpi eq, %arg1, %c0_i32 : i32
    %1 = arith.extui %0 : i1 to i32
    %c0_i32_0 = arith.constant 0 : i32
    %2 = arith.cmpi ne, %1, %c0_i32_0 : i32
    scf.if %2 {
      %cst_63 = arith.constant -1.000000e+30 : f32
      %102 = vector.broadcast %cst_63 : f32 to vector<2x8x1xf32>
      %c0_64 = arith.constant 0 : index
      %c0_65 = arith.constant 0 : index
      %c0_66 = arith.constant 0 : index
      %103 = vector.load %arg12[%c0_64, %c0_65, %c0_66] : memref<2x8x1xf32, #tpu.memory_space<vmem>>, vector<2x8x1xf32>
      tpu.vector_store %arg12[%c0_64, %c0_65, %c0_66], %102 {strides = array<i32>} : memref<2x8x1xf32, #tpu.memory_space<vmem>>, vector<2x8x1xf32>,
      %cst_67 = arith.constant 0.000000e+00 : f32
      %104 = vector.broadcast %cst_67 : f32 to vector<2x8x1xf32>
      %c0_68 = arith.constant 0 : index
      %c0_69 = arith.constant 0 : index
      %c0_70 = arith.constant 0 : index
      %105 = vector.load %arg13[%c0_68, %c0_69, %c0_70] : memref<2x8x1xf32, #tpu.memory_space<vmem>>, vector<2x8x1xf32>
      tpu.vector_store %arg13[%c0_68, %c0_69, %c0_70], %104 {strides = array<i32>} : memref<2x8x1xf32, #tpu.memory_space<vmem>>, vector<2x8x1xf32>,
      %cst_71 = arith.constant 0.000000e+00 : f32
      %106 = vector.broadcast %cst_71 : f32 to vector<2x8x32xf32>
      %c0_72 = arith.constant 0 : index
      %c0_73 = arith.constant 0 : index
      %c0_74 = arith.constant 0 : index
      %107 = vector.load %arg14[%c0_72, %c0_73, %c0_74] : memref<2x8x32xf32, #tpu.memory_space<vmem>>, vector<2x8x32xf32>
      tpu.vector_store %arg14[%c0_72, %c0_73, %c0_74], %106 {strides = array<i32>} : memref<2x8x32xf32, #tpu.memory_space<vmem>>, vector<2x8x32xf32>,
    } else {
    }
    %c0 = arith.constant 0 : index
    %c0_1 = arith.constant 0 : index
    %3 = vector.load %arg6[%c0, %c0_1] : memref<1x32xf32, #tpu.memory_space<vmem>>, vector<1x32xf32>
    %c0_2 = arith.constant 0 : index
    %c0_3 = arith.constant 0 : index
    %4 = memref.load %arg9[%c0_2, %c0_3] : memref<1x1xf32, #tpu.memory_space<smem>>
    %c0_4 = arith.constant 0 : index
    %c0_5 = arith.constant 0 : index
    %c0_6 = arith.constant 0 : index
    %5 = vector.load %arg2[%c0_4, %c0_5, %c0_6] : memref<8x8x32xbf16, #tpu.memory_space<vmem>>, vector<8x8x32xbf16>
    %6 = arith.extf %5 : vector<8x8x32xbf16> to vector<8x8x32xf32>
    %c0_7 = arith.constant 0 : index
    %c0_8 = arith.constant 0 : index
    %c0_9 = arith.constant 0 : index
    %7 = vector.load %arg3[%c0_7, %c0_8, %c0_9] : memref<8x8x1xf32, #tpu.memory_space<vmem>>, vector<8x8x1xf32>
    %8 = vector.shape_cast %7 : vector<8x8x1xf32> to vector<8x8xf32>
    %9 = vector.shape_cast %3 : vector<1x32xf32> to vector<1x1x32xf32>
    %10 = vector.broadcast %9 : vector<1x1x32xf32> to vector<8x8x32xf32>
    %11 = arith.mulf %6, %10 : vector<8x8x32xf32>
    %cst = arith.constant dense<0.000000e+00> : vector<8x8xf32>
    %12 = vector.multi_reduction <add>, %11, %cst [2] : vector<8x8x32xf32> to vector<8x8xf32>
    %13 = vector.broadcast %4 : f32 to vector<8x8xf32>
    %14 = arith.addf %12, %13 : vector<8x8xf32>
    %cst_10 = arith.constant 0.000000e+00 : f32
    %15 = vector.broadcast %cst_10 : f32 to vector<8x8xf32>
    %16 = arith.cmpf one, %8, %15 : vector<8x8xf32>
    %cst_11 = arith.constant -1.000000e+30 : f32
    %17 = vector.broadcast %cst_11 : f32 to vector<8x8xf32>
    %18 = arith.select %16, %14, %17 : vector<8x8xi1>, vector<8x8xf32>
    %c0_12 = arith.constant 0 : index
    %c0_13 = arith.constant 0 : index
    %c0_14 = arith.constant 0 : index
    %19 = vector.load %arg12[%c0_12, %c0_13, %c0_14] : memref<2x8x1xf32, #tpu.memory_space<vmem>>, vector<1x8x1xf32>
    %20 = vector.shape_cast %19 : vector<1x8x1xf32> to vector<8x1xf32>
    %c0_15 = arith.constant 0 : index
    %c0_16 = arith.constant 0 : index
    %c0_17 = arith.constant 0 : index
    %21 = vector.load %arg13[%c0_15, %c0_16, %c0_17] : memref<2x8x1xf32, #tpu.memory_space<vmem>>, vector<1x8x1xf32>
    %22 = vector.shape_cast %21 : vector<1x8x1xf32> to vector<8x1xf32>
    %c0_18 = arith.constant 0 : index
    %c0_19 = arith.constant 0 : index
    %c0_20 = arith.constant 0 : index
    %23 = vector.load %arg14[%c0_18, %c0_19, %c0_20] : memref<2x8x32xf32, #tpu.memory_space<vmem>>, vector<1x8x32xf32>
    %24 = vector.shape_cast %23 : vector<1x8x32xf32> to vector<8x32xf32>
    %cst_21 = arith.constant dense<0xFF800000> : vector<8xf32>
    %25 = vector.multi_reduction <maximumf>, %18, %cst_21 [1] : vector<8x8xf32> to vector<8xf32>
    %26 = vector.shape_cast %25 : vector<8xf32> to vector<8x1xf32>
    %27 = arith.maximumf %20, %26 : vector<8x1xf32>
    %28 = arith.subf %20, %27 : vector<8x1xf32>
    %29 = math.exp %28 : vector<8x1xf32>
    %30 = vector.broadcast %27 : vector<8x1xf32> to vector<8x8xf32>
    %31 = arith.subf %18, %30 : vector<8x8xf32>
    %32 = math.exp %31 : vector<8x8xf32>
    %33 = vector.shape_cast %32 : vector<8x8xf32> to vector<8x1x8xf32>
    "tpu.trace_start"() <{level = 10 : i32, message = "bqs,bsh->bqh"}> : () -> ()
    %cst_22 = arith.constant dense<0.000000e+00> : vector<8x1x32xf32>
    %34 = tpu.matmul %33, %6, %cst_22 {dimension_numbers = #tpu.dot_dimension_numbers<[2], [1], [1], [2], [0, 0, 0, 1, 1, 2], [0], [0]>} : vector<8x1x8xf32>, vector<8x8x32xf32>, vector<8x1x32xf32> -> vector<8x1x32xf32>
    "tpu.trace_stop"() : () -> ()
    %35 = vector.shape_cast %34 : vector<8x1x32xf32> to vector<8x32xf32>
    %c0_23 = arith.constant 0 : index
    %c0_24 = arith.constant 0 : index
    %c0_25 = arith.constant 0 : index
    %36 = vector.load %arg12[%c0_23, %c0_24, %c0_25] : memref<2x8x1xf32, #tpu.memory_space<vmem>>, vector<1x8x1xf32>
    %37 = vector.shape_cast %36 : vector<1x8x1xf32> to vector<8x1xf32>
    %38 = vector.shape_cast %27 : vector<8x1xf32> to vector<1x8x1xf32>
    tpu.vector_store %arg12[%c0_23, %c0_24, %c0_25], %38 {strides = array<i32>} : memref<2x8x1xf32, #tpu.memory_space<vmem>>, vector<1x8x1xf32>,
    %39 = arith.mulf %29, %22 : vector<8x1xf32>
    %cst_26 = arith.constant dense<0.000000e+00> : vector<8xf32>
    %40 = vector.multi_reduction <add>, %32, %cst_26 [1] : vector<8x8xf32> to vector<8xf32>
    %41 = vector.shape_cast %40 : vector<8xf32> to vector<8x1xf32>
    %42 = arith.addf %39, %41 : vector<8x1xf32>
    %c0_27 = arith.constant 0 : index
    %c0_28 = arith.constant 0 : index
    %c0_29 = arith.constant 0 : index
    %43 = vector.load %arg13[%c0_27, %c0_28, %c0_29] : memref<2x8x1xf32, #tpu.memory_space<vmem>>, vector<1x8x1xf32>
    %44 = vector.shape_cast %43 : vector<1x8x1xf32> to vector<8x1xf32>
    %45 = vector.shape_cast %42 : vector<8x1xf32> to vector<1x8x1xf32>
    tpu.vector_store %arg13[%c0_27, %c0_28, %c0_29], %45 {strides = array<i32>} : memref<2x8x1xf32, #tpu.memory_space<vmem>>, vector<1x8x1xf32>,
    %46 = vector.broadcast %29 : vector<8x1xf32> to vector<8x32xf32>
    %47 = arith.mulf %46, %24 : vector<8x32xf32>
    %48 = arith.addf %47, %35 : vector<8x32xf32>
    %c0_30 = arith.constant 0 : index
    %c0_31 = arith.constant 0 : index
    %c0_32 = arith.constant 0 : index
    %49 = vector.load %arg14[%c0_30, %c0_31, %c0_32] : memref<2x8x32xf32, #tpu.memory_space<vmem>>, vector<1x8x32xf32>
    %50 = vector.shape_cast %49 : vector<1x8x32xf32> to vector<8x32xf32>
    %51 = vector.shape_cast %48 : vector<8x32xf32> to vector<1x8x32xf32>
    tpu.vector_store %arg14[%c0_30, %c0_31, %c0_32], %51 {strides = array<i32>} : memref<2x8x32xf32, #tpu.memory_space<vmem>>, vector<1x8x32xf32>,
    %c0_33 = arith.constant 0 : index
    %c0_34 = arith.constant 0 : index
    %c0_35 = arith.constant 0 : index
    %52 = vector.load %arg4[%c0_33, %c0_34, %c0_35] : memref<8x8x32xbf16, #tpu.memory_space<vmem>>, vector<8x8x32xbf16>
    %53 = arith.extf %52 : vector<8x8x32xbf16> to vector<8x8x32xf32>
    %c0_36 = arith.constant 0 : index
    %c0_37 = arith.constant 0 : index
    %c0_38 = arith.constant 0 : index
    %54 = vector.load %arg5[%c0_36, %c0_37, %c0_38] : memref<8x8x1xf32, #tpu.memory_space<vmem>>, vector<8x8x1xf32>
    %55 = vector.shape_cast %54 : vector<8x8x1xf32> to vector<8x8xf32>
    %56 = vector.shape_cast %3 : vector<1x32xf32> to vector<1x1x32xf32>
    %57 = vector.broadcast %56 : vector<1x1x32xf32> to vector<8x8x32xf32>
    %58 = arith.mulf %53, %57 : vector<8x8x32xf32>
    %cst_39 = arith.constant dense<0.000000e+00> : vector<8x8xf32>
    %59 = vector.multi_reduction <add>, %58, %cst_39 [2] : vector<8x8x32xf32> to vector<8x8xf32>
    %60 = vector.broadcast %4 : f32 to vector<8x8xf32>
    %61 = arith.addf %59, %60 : vector<8x8xf32>
    %cst_40 = arith.constant 0.000000e+00 : f32
    %62 = vector.broadcast %cst_40 : f32 to vector<8x8xf32>
    %63 = arith.cmpf one, %55, %62 : vector<8x8xf32>
    %cst_41 = arith.constant -1.000000e+30 : f32
    %64 = vector.broadcast %cst_41 : f32 to vector<8x8xf32>
    %65 = arith.select %63, %61, %64 : vector<8x8xi1>, vector<8x8xf32>
    %c1 = arith.constant 1 : index
    %c0_42 = arith.constant 0 : index
    %c0_43 = arith.constant 0 : index
    %66 = vector.load %arg12[%c1, %c0_42, %c0_43] : memref<2x8x1xf32, #tpu.memory_space<vmem>>, vector<1x8x1xf32>
    %67 = vector.shape_cast %66 : vector<1x8x1xf32> to vector<8x1xf32>
    %c1_44 = arith.constant 1 : index
    %c0_45 = arith.constant 0 : index
    %c0_46 = arith.constant 0 : index
    %68 = vector.load %arg13[%c1_44, %c0_45, %c0_46] : memref<2x8x1xf32, #tpu.memory_space<vmem>>, vector<1x8x1xf32>
    %69 = vector.shape_cast %68 : vector<1x8x1xf32> to vector<8x1xf32>
    %c1_47 = arith.constant 1 : index
    %c0_48 = arith.constant 0 : index
    %c0_49 = arith.constant 0 : index
    %70 = vector.load %arg14[%c1_47, %c0_48, %c0_49] : memref<2x8x32xf32, #tpu.memory_space<vmem>>, vector<1x8x32xf32>
    %71 = vector.shape_cast %70 : vector<1x8x32xf32> to vector<8x32xf32>
    %cst_50 = arith.constant dense<0xFF800000> : vector<8xf32>
    %72 = vector.multi_reduction <maximumf>, %65, %cst_50 [1] : vector<8x8xf32> to vector<8xf32>
    %73 = vector.shape_cast %72 : vector<8xf32> to vector<8x1xf32>
    %74 = arith.maximumf %67, %73 : vector<8x1xf32>
    %75 = arith.subf %67, %74 : vector<8x1xf32>
    %76 = math.exp %75 : vector<8x1xf32>
    %77 = vector.broadcast %74 : vector<8x1xf32> to vector<8x8xf32>
    %78 = arith.subf %65, %77 : vector<8x8xf32>
    %79 = math.exp %78 : vector<8x8xf32>
    %80 = vector.shape_cast %79 : vector<8x8xf32> to vector<8x1x8xf32>
    "tpu.trace_start"() <{level = 10 : i32, message = "bqs,bsh->bqh"}> : () -> ()
    %cst_51 = arith.constant dense<0.000000e+00> : vector<8x1x32xf32>
    %81 = tpu.matmul %80, %53, %cst_51 {dimension_numbers = #tpu.dot_dimension_numbers<[2], [1], [1], [2], [0, 0, 0, 1, 1, 2], [0], [0]>} : vector<8x1x8xf32>, vector<8x8x32xf32>, vector<8x1x32xf32> -> vector<8x1x32xf32>
    "tpu.trace_stop"() : () -> ()
    %82 = vector.shape_cast %81 : vector<8x1x32xf32> to vector<8x32xf32>
    %c1_52 = arith.constant 1 : index
    %c0_53 = arith.constant 0 : index
    %c0_54 = arith.constant 0 : index
    %83 = vector.load %arg12[%c1_52, %c0_53, %c0_54] : memref<2x8x1xf32, #tpu.memory_space<vmem>>, vector<1x8x1xf32>
    %84 = vector.shape_cast %83 : vector<1x8x1xf32> to vector<8x1xf32>
    %85 = vector.shape_cast %74 : vector<8x1xf32> to vector<1x8x1xf32>
    tpu.vector_store %arg12[%c1_52, %c0_53, %c0_54], %85 {strides = array<i32>} : memref<2x8x1xf32, #tpu.memory_space<vmem>>, vector<1x8x1xf32>,
    %86 = arith.mulf %76, %69 : vector<8x1xf32>
    %cst_55 = arith.constant dense<0.000000e+00> : vector<8xf32>
    %87 = vector.multi_reduction <add>, %79, %cst_55 [1] : vector<8x8xf32> to vector<8xf32>
    %88 = vector.shape_cast %87 : vector<8xf32> to vector<8x1xf32>
    %89 = arith.addf %86, %88 : vector<8x1xf32>
    %c1_56 = arith.constant 1 : index
    %c0_57 = arith.constant 0 : index
    %c0_58 = arith.constant 0 : index
    %90 = vector.load %arg13[%c1_56, %c0_57, %c0_58] : memref<2x8x1xf32, #tpu.memory_space<vmem>>, vector<1x8x1xf32>
    %91 = vector.shape_cast %90 : vector<1x8x1xf32> to vector<8x1xf32>
    %92 = vector.shape_cast %89 : vector<8x1xf32> to vector<1x8x1xf32>
    tpu.vector_store %arg13[%c1_56, %c0_57, %c0_58], %92 {strides = array<i32>} : memref<2x8x1xf32, #tpu.memory_space<vmem>>, vector<1x8x1xf32>,
    %93 = vector.broadcast %76 : vector<8x1xf32> to vector<8x32xf32>
    %94 = arith.mulf %93, %71 : vector<8x32xf32>
    %95 = arith.addf %94, %82 : vector<8x32xf32>
    %c1_59 = arith.constant 1 : index
    %c0_60 = arith.constant 0 : index
    %c0_61 = arith.constant 0 : index
    %96 = vector.load %arg14[%c1_59, %c0_60, %c0_61] : memref<2x8x32xf32, #tpu.memory_space<vmem>>, vector<1x8x32xf32>
    %97 = vector.shape_cast %96 : vector<1x8x32xf32> to vector<8x32xf32>
    %98 = vector.shape_cast %95 : vector<8x32xf32> to vector<1x8x32xf32>
    tpu.vector_store %arg14[%c1_59, %c0_60, %c0_61], %98 {strides = array<i32>} : memref<2x8x32xf32, #tpu.memory_space<vmem>>, vector<1x8x32xf32>,
    %c1_i32 = arith.constant 1 : i32
    %99 = arith.cmpi eq, %arg1, %c1_i32 : i32
    %100 = arith.extui %99 : i1 to i32
    %c0_i32_62 = arith.constant 0 : i32
    %101 = arith.cmpi ne, %100, %c0_i32_62 : i32
    scf.if %101 {
      %c0_63 = arith.constant 0 : index
      %c0_64 = arith.constant 0 : index
      %c0_65 = arith.constant 0 : index
      %102 = vector.load %arg14[%c0_63, %c0_64, %c0_65] : memref<2x8x32xf32, #tpu.memory_space<vmem>>, vector<1x8x32xf32>
      %103 = vector.shape_cast %102 : vector<1x8x32xf32> to vector<8x32xf32>
      %c0_66 = arith.constant 0 : index
      %c0_67 = arith.constant 0 : index
      %c0_68 = arith.constant 0 : index
      %104 = vector.load %arg13[%c0_66, %c0_67, %c0_68] : memref<2x8x1xf32, #tpu.memory_space<vmem>>, vector<1x8x1xf32>
      %105 = vector.shape_cast %104 : vector<1x8x1xf32> to vector<8x1xf32>
      %106 = tpu.reciprocal %105 {approx = true} : vector<8x1xf32> -> vector<8x1xf32>
      %107 = vector.broadcast %106 : vector<8x1xf32> to vector<8x32xf32>
      %108 = arith.mulf %103, %107 : vector<8x32xf32>
      %c1_69 = arith.constant 1 : index
      %c0_70 = arith.constant 0 : index
      %c0_71 = arith.constant 0 : index
      %109 = vector.load %arg14[%c1_69, %c0_70, %c0_71] : memref<2x8x32xf32, #tpu.memory_space<vmem>>, vector<1x8x32xf32>
      %110 = vector.shape_cast %109 : vector<1x8x32xf32> to vector<8x32xf32>
      %c1_72 = arith.constant 1 : index
      %c0_73 = arith.constant 0 : index
      %c0_74 = arith.constant 0 : index
      %111 = vector.load %arg13[%c1_72, %c0_73, %c0_74] : memref<2x8x1xf32, #tpu.memory_space<vmem>>, vector<1x8x1xf32>
      %112 = vector.shape_cast %111 : vector<1x8x1xf32> to vector<8x1xf32>
      %113 = tpu.reciprocal %112 {approx = true} : vector<8x1xf32> -> vector<8x1xf32>
      %114 = vector.broadcast %113 : vector<8x1xf32> to vector<8x32xf32>
      %115 = arith.mulf %110, %114 : vector<8x32xf32>
      %c0_75 = arith.constant 0 : index
      %c0_76 = arith.constant 0 : index
      %116 = vector.load %arg7[%c0_75, %c0_76] : memref<1x32xf32, #tpu.memory_space<vmem>>, vector<1x32xf32>
      %117 = vector.broadcast %116 : vector<1x32xf32> to vector<8x32xf32>
      %118 = arith.mulf %108, %117 : vector<8x32xf32>
      %cst_77 = arith.constant dense<0.000000e+00> : vector<8xf32>
      %119 = vector.multi_reduction <add>, %118, %cst_77 [1] : vector<8x32xf32> to vector<8xf32>
      %120 = vector.shape_cast %119 : vector<8xf32> to vector<8x1xf32>
      %c0_78 = arith.constant 0 : index
      %c0_79 = arith.constant 0 : index
      %121 = vector.load %arg8[%c0_78, %c0_79] : memref<1x32xf32, #tpu.memory_space<vmem>>, vector<1x32xf32>
      %122 = vector.broadcast %121 : vector<1x32xf32> to vector<8x32xf32>
      %123 = arith.mulf %115, %122 : vector<8x32xf32>
      %cst_80 = arith.constant dense<0.000000e+00> : vector<8xf32>
      %124 = vector.multi_reduction <add>, %123, %cst_80 [1] : vector<8x32xf32> to vector<8xf32>
      %125 = vector.shape_cast %124 : vector<8xf32> to vector<8x1xf32>
      %126 = arith.addf %120, %125 : vector<8x1xf32>
      %c0_81 = arith.constant 0 : index
      %c0_82 = arith.constant 0 : index
      %127 = memref.load %arg10[%c0_81, %c0_82] : memref<1x1xf32, #tpu.memory_space<smem>>
      %128 = vector.broadcast %127 : f32 to vector<8x1xf32>
      %129 = arith.addf %126, %128 : vector<8x1xf32>
      %130 = vector.shape_cast %129 : vector<8x1xf32> to vector<8x1xf32>
      %131 = vector.broadcast %130 : vector<8x1xf32> to vector<8x128xf32>
      %c0_83 = arith.constant 0 : index
      %c0_84 = arith.constant 0 : index
      %132 = vector.load %arg11[%c0_83, %c0_84] : memref<8x128xf32, #tpu.memory_space<vmem>>, vector<8x128xf32>
      tpu.vector_store %arg11[%c0_83, %c0_84], %131 {strides = array<i32>} : memref<8x128xf32, #tpu.memory_space<vmem>>, vector<8x128xf32>,
    } else {
    }
    return
  }
  func.func @transform_0(%arg0: i32, %arg1: i32) -> (i32, i32, i32) {
    %c0_i32 = arith.constant 0 : i32
    %c0_i32_0 = arith.constant 0 : i32
    return %arg0, %arg1, %c0_i32 : i32, i32, i32
  }
  func.func @transform_1(%arg0: i32, %arg1: i32) -> (i32, i32, i32) {
    %c0_i32 = arith.constant 0 : i32
    %c0_i32_0 = arith.constant 0 : i32
    return %arg0, %arg1, %c0_i32 : i32, i32, i32
  }
  func.func @transform_2(%arg0: i32, %arg1: i32) -> (i32, i32, i32) {
    %c0_i32 = arith.constant 0 : i32
    %c0_i32_0 = arith.constant 0 : i32
    return %arg0, %arg1, %c0_i32 : i32, i32, i32
  }
  func.func @transform_3(%arg0: i32, %arg1: i32) -> (i32, i32, i32) {
    %c0_i32 = arith.constant 0 : i32
    %c0_i32_0 = arith.constant 0 : i32
    return %arg0, %arg1, %c0_i32 : i32, i32, i32
  }
  func.func @transform_4(%arg0: i32, %arg1: i32) -> (i32, i32) {
    %c0_i32 = arith.constant 0 : i32
    %c0_i32_0 = arith.constant 0 : i32
    %c0_i32_1 = arith.constant 0 : i32
    return %c0_i32, %c0_i32_0 : i32, i32
  }
  func.func @transform_5(%arg0: i32, %arg1: i32) -> (i32, i32) {
    %c0_i32 = arith.constant 0 : i32
    %c0_i32_0 = arith.constant 0 : i32
    %c0_i32_1 = arith.constant 0 : i32
    return %c0_i32, %c0_i32_0 : i32, i32
  }
  func.func @transform_6(%arg0: i32, %arg1: i32) -> (i32, i32) {
    %c0_i32 = arith.constant 0 : i32
    %c0_i32_0 = arith.constant 0 : i32
    %c0_i32_1 = arith.constant 0 : i32
    return %c0_i32, %c0_i32_0 : i32, i32
  }
  func.func @transform_7(%arg0: i32, %arg1: i32) -> (i32, i32) {
    %c0_i32 = arith.constant 0 : i32
    %c0_i32_0 = arith.constant 0 : i32
    %c0_i32_1 = arith.constant 0 : i32
    return %c0_i32, %c0_i32_0 : i32, i32
  }
  func.func @transform_8(%arg0: i32, %arg1: i32) -> (i32, i32) {
    %c0_i32 = arith.constant 0 : i32
    %c0_i32_0 = arith.constant 0 : i32
    %c0_i32_1 = arith.constant 0 : i32
    return %c0_i32, %c0_i32_0 : i32, i32
  }
  func.func @transform_9(%arg0: i32, %arg1: i32) -> (i32, i32) {
    %c0_i32 = arith.constant 0 : i32
    %c0_i32_0 = arith.constant 0 : i32
    return %arg0, %c0_i32 : i32, i32
  }
}

</mosaic_0001>

<bundles_post_ra>
// kernel: tpu_custom_call.1
= control target key start
LH: loop header
LB: loop body
LE: loop exit
PB: predicated region body
PF: predicated region fallthrough
CT: control target
= control target key end

     0   :  { %s3914_s0 = inlined_call_operand.vmem [shape: bf16[16,16,32], index: 0, kind: input, shape index: {}]   ;;  %s3915_s1 = inlined_call_operand.vmem [shape: f32[16,16,1], index: 1, kind: input, shape index: {}]   ;;  %s3916_s2 = inlined_call_operand.vmem [shape: bf16[16,16,32], index: 2, kind: input, shape index: {}]   ;;  %s3917_s3 = inlined_call_operand.vmem [shape: f32[16,16,1], index: 3, kind: input, shape index: {}]   ;;  %s3918_s4 = inlined_call_operand.vmem [shape: f32[1,32], index: 4, kind: input, shape index: {}]   ;;  %s3919_s5 = inlined_call_operand.vmem [shape: f32[1,32], index: 5, kind: input, shape index: {}]   ;;  %s3920_s6 = inlined_call_operand.vmem [shape: f32[1,32], index: 6, kind: input, shape index: {}]   ;;  %s3921_s7 = inlined_call_operand.<no memory space> [shape: f32[1,1], index: 7, kind: input, shape index: {}]   ;;  %s3922_s8 = inlined_call_operand.<no memory space> [shape: f32[1,1], index: 8, kind: input, shape index: {}]   ;;  %s3923_s9 = inlined_call_operand.hbm [shape: f32[16,128], index: 9, kind: output, shape index: {}]  }
   0x1   :  { %3936 = sst [smem:[#allocation17_spill]] %s3914_s0 }
   0x2   :  { %14 = sst [smem:[#allocation5]] %s3921_s7 }
   0x3   :  { %15 = sst [smem:[#allocation6]] %s3922_s8 }
   0x4   :  { %16 = vsyncpa [#allocation12], 0 }
   0x5   :  { %18 = vsyncpa [#allocation12 + $0x1], 0  ;;  %s3280_s13 = smov 0   ;;  %s3282_s14 = smov 0  }
   0x6   :  { %s3284_s15 = smov 0   ;;  %s3286_s16 = smov 0  }
   0x7   :  { %s3288_s17 = smov 0   ;;  %s3290_s18 = smov 0  }
   0x8   :  { %s3292_s19 = smov 0   ;;  %s3294_s7 = smov 0  }
   0x9   :  { %s3296_s20 = smov 0   ;;  %s3298_s8 = smov 0  }
   0xa LB: > { %s2766_s21 = sadd.s32 4294967295, %s3215_s8   ;;  %s2767_s22 = sadd.s32 4294967294, %s3215_s8   ;;  %s3215_s8 = sphi %s3298_s8, %s24_s8   ;;  %s3211_s20 = sphi %s3296_s20, %s3965_s20   ;;  %s3207_s7 = sphi %s3294_s7, %s3964_s7   ;;  %s3203_s19 = sphi %s3292_s19, %s3963_s19   ;;  %s3199_s18 = sphi %s3290_s18, %s3962_s18   ;;  %s3195_s17 = sphi %s3288_s17, %s3961_s17   ;;  %s3191_s16 = sphi %s3286_s16, %s3960_s16   ;;  %s3187_s15 = sphi %s3284_s15, %s3959_s15   ;;  %s3183_s14 = sphi %s3282_s14, %s3958_s14   ;;  %s3179_s13 = sphi %s3280_s13, %s3957_s13  }
   0xb   : > { %s33_s23 = sadd.s32 1, %s3207_s7  ;;  %s36_s24 = sadd.s32 1, %s3211_s20 }
   0xc   : > { %p34_p0 = scmp.ge.s32.totalorder %s33_s23, 2  ;;  %s45_s25 = sadd.s32 1, %s3195_s17 }
   0xd   : > { %p52_p1 = scmp.ne.s32.totalorder %s3195_s17, %s3191_s16  ;;  %p53_p2 = scmp.eq.s32.totalorder %s3215_s8, 0 }
   0xe   : > { %s3967_s23 = smov (%p34_p0, %s33_s23), 0  ;;  %s3969_s24 = smov (!%p34_p0, %s36_s24), %s3211_s20 }
   0xf   : > { %3937 = sst [smem:[#allocation14_spill]] %s3967_s23  ;;  %s41_s26 = ssub.s32 %s3207_s7, %s3967_s23 }
  0x10   : > { %p3343_p3 = por %p53_p2, %p52_p1  ;;  %p38_p4 = scmp.ge.s32.totalorder %s3969_s24, 2 }
  0x11   : > { %s260_s28 = sadd.s32 1, %s3187_s15  ;;  %p270_p5 = scmp.ne.s32.totalorder %s3187_s15, %s3183_s14 }
  0x12   : > { %p271_p6 = scmp.eq.s32.totalorder %s2766_s21, 3  ;;  %s3971_s24 = smov (%p38_p4, %s3969_s24), 0 }
  0x13   : > { %3939 = sst [smem:[#allocation15_spill]] %s3971_s24  ;;  %p276_p8 = scmp.ne.s32.totalorder %s3183_s14, %s3179_s13 }
  0x14   : > { %p3352_p7 = por %p271_p6, %p270_p5  ;;  %s40_s30 = ssub.s32 %s3211_s20, %s3971_s24 }
  0x15   : > { %p277_p9 = scmp.eq.s32.totalorder %s2767_s22, 3  ;;  %s42_s10 = sor.u32 %s41_s26, %s40_s30 }
  0x16   : > { %p258_p10 = scmp.eq.s32.totalorder %s40_s30, 0  ;;  %p43_p11 = scmp.eq.s32.totalorder %s42_s10, 0 }
  0x17   : > { %p3360_p12 = por %p277_p9, %p276_p8  ;;  %p2769_p13 = scmp.ge.s32.totalorder %s3215_s8, 4 }
  0x18   : > { %s3365_s12 = scalar_select %p258_p10, %s3187_s15, %s260_s28  }
  0x19   : > { %s3941_s11 = scalar_select %p3360_p12, 1, 0 }
  0x1a   : > { %s3368_s21 = scalar_select %p43_p11, %s3195_s17, %s45_s25  }
  0x1b   : > { %3942 = sst [smem:[#allocation16_spill]] %s3941_s11  ;;  %308 = sbr.rel (%p2769_p13) target bundleno = 78 (0x4e), region = 36 }
  0x20   : > { %311 = sbr.rel (!%p3343_p3) target bundleno = 47 (0x2f), region = 40  ;;  %s313_s22 = sand.u32 (%p3343_p3), 1, %s3195_s17  }
  0x21   : > { %s2817_s26 = sshll.u32 (%p3343_p3), %s3211_s20, 4  ;;  %s2770_s30 = sshll.u32 (%p3343_p3), %s313_s22, 5 }
  0x22   : > { %s318_s10 = sadd.s32 (%p3343_p3), %s3207_s7, %s2817_s26  ;;  %s3943_s0 = sld [smem:[#allocation17_spill]] (%p3343_p3) }
  0x23   : > { %s2773_s24 = sshll.u32 (%p3343_p3), %s318_s10, 2  ;;  %s315_s25 = scalar_lea.vmem (%p3343_p3), [#allocation7], %s2770_s30 }
  0x28   : > { %s320_s28 = scalar_lea.vmem %s3943_s0, %s2773_s24 }
  0x29   : > { %v337_v0 = vld [vmem:[%s320_s28] sm:$0xf]  ;;  %v339_v1 = vld [vmem:[%s320_s28 + $0x8] sm:$0xf]  ;;  %v341_v2 = vld [vmem:[%s320_s28 + $0x10] sm:$0xf] }
  0x2a   : > { %338 = vst [vmem:[%s315_s25] sm:$0xf] %v337_v0  ;;  %340 = vst [vmem:[%s315_s25 + $0x4] sm:$0xf] %v339_v1  ;;  %v343_v3 = vld [vmem:[%s320_s28 + $0x18] sm:$0xf] }
  0x2b   : > { %342 = vst [vmem:[%s315_s25 + $0x8] sm:$0xf] %v341_v2  ;;  %v345_v4 = vld [vmem:[%s320_s28 + $0x20] sm:$0xf]  ;;  %v347_v5 = vld [vmem:[%s320_s28 + $0x28] sm:$0xf] }
  0x2c   : > { %344 = vst [vmem:[%s315_s25 + $0xc] sm:$0xf] %v343_v3  ;;  %346 = vst [vmem:[%s315_s25 + $0x10] sm:$0xf] %v345_v4  ;;  %v349_v6 = vld [vmem:[%s320_s28 + $0x30] sm:$0xf] }
  0x2d   : > { %348 = vst [vmem:[%s315_s25 + $0x14] sm:$0xf] %v347_v5  ;;  %v351_v7 = vld [vmem:[%s320_s28 + $0x38] sm:$0xf]  ;;  %350 = vst [vmem:[%s315_s25 + $0x18] sm:$0xf] %v349_v6 }
  0x2e   : > { %352 = vst [vmem:[%s315_s25 + $0x1c] sm:$0xf] %v351_v7 }
  0x2f PF: > { %392 = sbr.rel (!%p3343_p3) target bundleno = 57 (0x39), region = 81  ;;  %s394_s23 = sand.u32 (%p3343_p3), 1, %s3195_s17  }
  0x30   : > { %s2818_s24 = sshll.u32 (%p3343_p3), %s3211_s20, 4  ;;  %s2774_s11 = sshll.u32 (%p3343_p3), %s394_s23, 6 }
  0x31   : > { %s399_s22 = sadd.s32 (%p3343_p3), %s3207_s7, %s2818_s24  ;;  %s396_s28 = scalar_lea.vmem (%p3343_p3), [#allocation8], %s2774_s11 }
  0x32   : > { %s2777_s26 = sshll.u32 (%p3343_p3), %s399_s22, 3 }
  0x33   : > { %s401_s0 = scalar_lea.vmem (%p3343_p3), %s3915_s1, %s2777_s26 }
  0x34   : > { %v444_v8 = vld [vmem:[%s401_s0] sm:$0xff]  ;;  %v446_v9 = vld [vmem:[%s401_s0 + $0x10] sm:$0xff] }
  0x35   : > { %v448_v10 = vld [vmem:[%s401_s0 + $0x20] sm:$0xff]  ;;  %445 = vst [vmem:[%s396_s28] sm:$0xff] %v444_v8  ;;  %447 = vst [vmem:[%s396_s28 + $0x8] sm:$0xff] %v446_v9  ;;  %v450_v11 = vld [vmem:[%s401_s0 + $0x30] sm:$0xff] }
  0x36   : > { %449 = vst [vmem:[%s396_s28 + $0x10] sm:$0xff] %v448_v10  ;;  %v452_v12 = vld [vmem:[%s401_s0 + $0x40] sm:$0xff]  ;;  %v454_v13 = vld [vmem:[%s401_s0 + $0x50] sm:$0xff]  ;;  %451 = vst [vmem:[%s396_s28 + $0x18] sm:$0xff] %v450_v11 }
  0x37   : > { %453 = vst [vmem:[%s396_s28 + $0x20] sm:$0xff] %v452_v12  ;;  %455 = vst [vmem:[%s396_s28 + $0x28] sm:$0xff] %v454_v13  ;;  %v456_v14 = vld [vmem:[%s401_s0 + $0x60] sm:$0xff]  ;;  %v458_v15 = vld [vmem:[%s401_s0 + $0x70] sm:$0xff] }
  0x38   : > { %457 = vst [vmem:[%s396_s28 + $0x30] sm:$0xff] %v456_v14  ;;  %459 = vst [vmem:[%s396_s28 + $0x38] sm:$0xff] %v458_v15 }
  0x39 PF: > { %465 = sbr.rel (!%p3343_p3) target bundleno = 68 (0x44), region = 119  ;;  %s467_s25 = sand.u32 (%p3343_p3), 1, %s3195_s17  }
  0x3a   : > { %s2819_s23 = sshll.u32 (%p3343_p3), %s3211_s20, 4  ;;  %s2778_s24 = sshll.u32 (%p3343_p3), %s467_s25, 5 }
  0x3b   : > { %s472_s11 = sadd.s32 (%p3343_p3), %s3207_s7, %s2819_s23  ;;  %s469_s0 = scalar_lea.vmem (%p3343_p3), [#allocation9], %s2778_s24 }
  0x3c   : > { %s2781_s22 = sshll.u32 (%p3343_p3), %s472_s11, 2 }
  0x3d   : > { %s474_s10 = scalar_lea.vmem (%p3343_p3), %s3916_s2, %s2781_s22 }
  0x3e   : > { %v491_v16 = vld [vmem:[%s474_s10] sm:$0xf]  ;;  %v493_v17 = vld [vmem:[%s474_s10 + $0x8] sm:$0xf]  ;;  %v495_v18 = vld [vmem:[%s474_s10 + $0x10] sm:$0xf] }
  0x3f   : > { %492 = vst [vmem:[%s469_s0] sm:$0xf] %v491_v16  ;;  %494 = vst [vmem:[%s469_s0 + $0x4] sm:$0xf] %v493_v17  ;;  %v497_v19 = vld [vmem:[%s474_s10 + $0x18] sm:$0xf] }
  0x40   : > { %496 = vst [vmem:[%s469_s0 + $0x8] sm:$0xf] %v495_v18  ;;  %v499_v20 = vld [vmem:[%s474_s10 + $0x20] sm:$0xf]  ;;  %v501_v21 = vld [vmem:[%s474_s10 + $0x28] sm:$0xf] }
  0x41   : > { %498 = vst [vmem:[%s469_s0 + $0xc] sm:$0xf] %v497_v19  ;;  %500 = vst [vmem:[%s469_s0 + $0x10] sm:$0xf] %v499_v20  ;;  %v503_v22 = vld [vmem:[%s474_s10 + $0x30] sm:$0xf] }
  0x42   : > { %502 = vst [vmem:[%s469_s0 + $0x14] sm:$0xf] %v501_v21  ;;  %v505_v23 = vld [vmem:[%s474_s10 + $0x38] sm:$0xf]  ;;  %504 = vst [vmem:[%s469_s0 + $0x18] sm:$0xf] %v503_v22 }
  0x43   : > { %506 = vst [vmem:[%s469_s0 + $0x1c] sm:$0xf] %v505_v23 }
  0x44 PF: > { %546 = sbr.rel (!%p3343_p3) target bundleno = 78 (0x4e), region = 160  ;;  %s548_s28 = sand.u32 (%p3343_p3), 1, %s3195_s17  }
  0x45   : > { %s2820_s25 = sshll.u32 (%p3343_p3), %s3211_s20, 4  ;;  %s2782_s23 = sshll.u32 (%p3343_p3), %s548_s28, 6 }
  0x46   : > { %s553_s24 = sadd.s32 (%p3343_p3), %s3207_s7, %s2820_s25  ;;  %s550_s10 = scalar_lea.vmem (%p3343_p3), [#allocation10], %s2782_s23 }
  0x47   : > { %s2785_s11 = sshll.u32 (%p3343_p3), %s553_s24, 3 }
  0x48   : > { %s555_s30 = scalar_lea.vmem (%p3343_p3), %s3917_s3, %s2785_s11 }
  0x49   : > { %v598_v24 = vld [vmem:[%s555_s30] sm:$0xff]  ;;  %v600_v25 = vld [vmem:[%s555_s30 + $0x10] sm:$0xff] }
  0x4a   : > { %v602_v26 = vld [vmem:[%s555_s30 + $0x20] sm:$0xff]  ;;  %599 = vst [vmem:[%s550_s10] sm:$0xff] %v598_v24  ;;  %601 = vst [vmem:[%s550_s10 + $0x8] sm:$0xff] %v600_v25  ;;  %v604_v27 = vld [vmem:[%s555_s30 + $0x30] sm:$0xff] }
  0x4b   : > { %603 = vst [vmem:[%s550_s10 + $0x10] sm:$0xff] %v602_v26  ;;  %v606_v28 = vld [vmem:[%s555_s30 + $0x40] sm:$0xff]  ;;  %v608_v29 = vld [vmem:[%s555_s30 + $0x50] sm:$0xff]  ;;  %605 = vst [vmem:[%s550_s10 + $0x18] sm:$0xff] %v604_v27 }
  0x4c   : > { %607 = vst [vmem:[%s550_s10 + $0x20] sm:$0xff] %v606_v28  ;;  %609 = vst [vmem:[%s550_s10 + $0x28] sm:$0xff] %v608_v29  ;;  %v610_v30 = vld [vmem:[%s555_s30 + $0x60] sm:$0xff]  ;;  %v612_v31 = vld [vmem:[%s555_s30 + $0x70] sm:$0xff] }
  0x4d   : > { %611 = vst [vmem:[%s550_s10 + $0x30] sm:$0xff] %v610_v30  ;;  %613 = vst [vmem:[%s550_s10 + $0x38] sm:$0xff] %v612_v31 }
  0x4e PF: > { %p2786_p0 = scmp.ge.s32.totalorder %s3215_s8, 1  ;;  %p618_p1 = scmp.lt.s32.totalorder %s3215_s8, 5 }
  0x50   : > { %p619_p2 = pnand %p2786_p0, %p618_p1 }
  0x51   : > { %s625_s27 = sand.u32 (!%p619_p2), 1, %s3191_s16   ;;  %s690_s0 = sand.u32 (!%p619_p2), 1, %s3183_s14  }
  0x52   : > { %622 = sbr.rel (%p619_p2) target bundleno = 1353 (0x549), region = 198  ;;  %s2787_s28 = sshll.u32 (!%p619_p2), %s625_s27, 5 }
  0x53   : > { %s2788_s25 = sshll.u32 (!%p619_p2), %s625_s27, 6  ;;  %s3409_s23 = sshll.u32 (!%p619_p2), %s690_s0, 3 }
  0x54   : > { %s3411_s24 = scalar_lea.vmem (!%p619_p2), [#allocation7], %s2787_s28  ;;  %s3413_s11 = scalar_lea.vmem (!%p619_p2), [#allocation8], %s2788_s25 }
  0x55   : > { %s3415_s22 = scalar_lea.vmem (!%p619_p2), [#allocation9], %s2787_s28  ;;  %s3417_s26 = scalar_lea.vmem (!%p619_p2), [#allocation10], %s2788_s25 }
  0x56   : > { %s692_s30 = scalar_lea.vmem (!%p619_p2), [#allocation11], %s3409_s23  ;;  %p2792_p3 = scmp.ne.s32.totalorder (!%p619_p2), %s3199_s18, 0 }
  0x58   : > { %700 = sbr.rel (%p2792_p3) target bundleno = 97 (0x61), region = 218 }
  0x5d   : > { %vm701_vm0 = vcmask 7168   ;;  %vm706_vm1 = vcmask 261120   ;;  %v3217_v32 = vmov -1e+30   ;;  %v3218_v33 = vmov 0.0  }
  0x5e   : > { %702 = vst.msk [vmem:[#allocation2] sm:$0xff] %vm701_vm0, %v3217_v32  ;;  %703 = vst.msk [vmem:[#allocation2 + $0x8] sm:$0xff] %vm701_vm0, %v3217_v32 }
  0x5f   : > { %704 = vst.msk [vmem:[#allocation3] sm:$0xff] %vm701_vm0, %v3218_v33  ;;  %705 = vst.msk [vmem:[#allocation3 + $0x8] sm:$0xff] %vm701_vm0, %v3218_v33 }
  0x60   : > { %707 = vst.msk [vmem:[#allocation4] sm:$0xff] %vm706_vm1, %v3218_v33  ;;  %708 = vst.msk [vmem:[#allocation4 + $0x8] sm:$0xff] %vm706_vm1, %v3218_v33 }
  0x61 PF: > { %v3424_v34 = vld [vmem:[%s3918_s4] ss:$0 sm:$0xff]  ;;  %v3427_v35 = vld [vmem:[%s3411_s24 + $0x8] sm:$0xff]   ;;  %v3430_v36 = vld [vmem:[%s3411_s24] sm:$0xff]   ;;  %vm749_vm2 = vcmask 261120   ;;  %v3219_v8 = vmov 0  }
  0x62   : > { %v2827_v37 = vunpack.c.l.bf16 %v3427_v35  ;;  %v2823_v38 = vunpack.c.l.bf16 %v3430_v36  ;;  %v2828_v39 = vunpack.c.h.bf16 %v3427_v35  ;;  %v2824_v40 = vunpack.c.h.bf16 %v3430_v36  ;;  %v3437_v41 = vld [vmem:[%s3411_s24 + $0x10] sm:$0xff]   ;;  %v3454_v48 = vld [vmem:[%s3411_s24 + $0x18] sm:$0xff]   ;;  %v3465_v55 = vld [vmem:[%s3415_s22] sm:$0xff]   ;;  %3064 = vset.pattern.permute.xlu0 %v3219_v8  ;;  %3065 = vset.pattern.permute.xlu1 %v3219_v8  ;;  %s710_s27 = sld [smem:[#allocation5]]  ;;  %p2810_p4 = scmp.ne.s32.totalorder %s3199_s18, 1 }
  0x63   : > { %v2832_v42 = vunpack.c.h.bf16 %v3437_v41  ;;  %v2831_v43 = vunpack.c.l.bf16 %v3437_v41  ;;  %v3935_v52 = vunpack.c.h.bf16 %v3454_v48  ;;  %v2835_v57 = vunpack.c.l.bf16 %v3454_v48  ;;  %v3482_v0 = vld [vmem:[%s3415_s22 + $0x8] sm:$0xff]   ;;  %v3490_v4 = vld [vmem:[%s3415_s22 + $0x10] sm:$0xff]   ;;  %v3503_v12 = vld [vmem:[%s3415_s22 + $0x18] sm:$0xff]  }
  0x64   : > { %v743_v44 = vmul.f32 %v2827_v37, %v3424_v34  ;;  %v741_v45 = vmul.f32 %v2823_v38, %v3424_v34  ;;  %v744_v46 = vmul.f32 %v2828_v39, %v3424_v34  ;;  %v742_v47 = vmul.f32 %v2824_v40, %v3424_v34  ;;  %v727_v28 = vld [vmem:[%s3413_s11] sm:$0xff]  ;;  %v728_v33 = vld [vmem:[%s3413_s11 + $0x8] sm:$0xff] }
  0x65   : > { %v746_v51 = vmul.f32 %v2832_v42, %v3424_v34  ;;  %v745_v56 = vmul.f32 %v2831_v43, %v3424_v34  ;;  %v748_v58 = vmul.f32 %v3935_v52, %v3424_v34  ;;  %v3933_v59 = vunpack.c.h.bf16 %v3465_v55 }
  0x66   : > { %v756_v49 = vsel %vm749_vm2, %v743_v44, 0.0  ;;  %v750_v50 = vsel %vm749_vm2, %v741_v45, 0.0  ;;  %v759_v53 = vsel %vm749_vm2, %v744_v46, 0.0  ;;  %v753_v54 = vsel %vm749_vm2, %v742_v47, 0.0  ;;  %v729_v44 = vld [vmem:[%s3413_s11 + $0x10] sm:$0xff] }
  0x67   : > { %757 = vadd.xlane.f32.xlu1 %v756_v49  ;;  %751 = vadd.xlane.f32.xlu0 %v750_v50  ;;  %v765_v60 = vsel %vm749_vm2, %v746_v51, 0.0  ;;  %v762_v61 = vsel %vm749_vm2, %v745_v56, 0.0  ;;  %v747_v62 = vmul.f32 %v2835_v57, %v3424_v34  ;;  %v3934_v63 = vunpack.c.l.bf16 %v3465_v55  ;;  %v730_v51 = vld [vmem:[%s3413_s11 + $0x18] sm:$0xff] }
  0x68   : > { %v771_v1 = vsel %vm749_vm2, %v748_v58, 0.0  ;;  %v1671_v2 = vmul.f32 %v3933_v59, %v3424_v34  ;;  %v3931_v3 = vunpack.c.h.bf16 %v3482_v0  ;;  %v3932_v7 = vunpack.c.l.bf16 %v3482_v0 }
  0x69   : > { %v768_v5 = vsel %vm749_vm2, %v747_v62, 0.0  ;;  %v1670_v6 = vmul.f32 %v3934_v63, %v3424_v34  ;;  %v3929_v10 = vunpack.c.h.bf16 %v3490_v4  ;;  %v3930_v15 = vunpack.c.l.bf16 %v3490_v4 }
  0x6a   : > { %v1681_v9 = vsel %vm749_vm2, %v1671_v2, 0.0  ;;  %v1673_v11 = vmul.f32 %v3931_v3, %v3424_v34  ;;  %v1672_v14 = vmul.f32 %v3932_v7, %v3424_v34  ;;  %v3927_v16 = vunpack.c.h.bf16 %v3503_v12  ;;  %v1663_v2 = vld [vmem:[%s3417_s26 + $0x8] sm:$0xff] }
  0x6b   : > { %760 = vadd.xlane.f32.xlu1 %v759_v53  ;;  %754 = vadd.xlane.f32.xlu0 %v753_v54  ;;  %v1678_v13 = vsel %vm749_vm2, %v1670_v6, 0.0  ;;  %v3928_v17 = vunpack.c.l.bf16 %v3503_v12  ;;  %v1675_v19 = vmul.f32 %v3929_v10, %v3424_v34  ;;  %v1674_v21 = vmul.f32 %v3930_v15, %v3424_v34 }
  0x6c   : > { %v1687_v18 = vsel %vm749_vm2, %v1673_v11, 0.0  ;;  %v1684_v20 = vsel %vm749_vm2, %v1672_v14, 0.0  ;;  %v1677_v23 = vmul.f32 %v3927_v16, %v3424_v34  ;;  %v3531_v29 = vstv %s710_s27  ;;  %v1665_v14 = vld [vmem:[%s3417_s26 + $0x18] sm:$0xff] }
  0x6d   : > { %v1693_v22 = vsel %vm749_vm2, %v1675_v19, 0.0  ;;  %v1690_v24 = vsel %vm749_vm2, %v1674_v21, 0.0  ;;  %v1676_v25 = vmul.f32 %v3928_v17, %v3424_v34  ;;  %vm783_vm3 = vcmp.ne.f32.partialorder %v727_v28, 0.0  ;;  %v733_v19 = vld [vmem:[%s3413_s11 + $0x30] sm:$0xff] }
  0x6e   : > { %v1699_v26 = vsel %vm749_vm2, %v1677_v23, 0.0  ;;  %vm784_vm4 = vcmp.ne.f32.partialorder %v728_v33, 0.0  ;;  %vm785_vm5 = vcmp.ne.f32.partialorder %v729_v44, 0.0  ;;  %vm786_vm6 = vcmp.ne.f32.partialorder %v730_v51, 0.0  ;;  %v1669_v33 = vld [vmem:[%s3417_s26 + $0x38] sm:$0xff] }
  0x6f   : > { %766 = vadd.xlane.f32.xlu1 %v765_v60  ;;  %763 = vadd.xlane.f32.xlu0 %v762_v61  ;;  %v1696_v27 = vsel %vm749_vm2, %v1676_v25, 0.0  ;;  %v731_v60 = vld [vmem:[%s3413_s11 + $0x20] sm:$0xff]  ;;  %vm1711_vm8 = vcmp.ne.f32.partialorder %v1663_v2, 0.0  ;;  %vm1713_vm10 = vcmp.ne.f32.partialorder %v1665_v14, 0.0  ;;  %v1667_v25 = vld [vmem:[%s3417_s26 + $0x28] sm:$0xff]  ;;  %vm789_vm11 = vcmp.ne.f32.partialorder %v733_v19, 0.0 }
  0x70   : > { %vm787_vm7 = vcmp.ne.f32.partialorder %v731_v60, 0.0  ;;  %vm1715_vm12 = vcmp.ne.f32.partialorder %v1667_v25, 0.0  ;;  %vm1717_vm14 = vcmp.ne.f32.partialorder %v1669_v33, 0.0  ;;  %v1666_v2 = vld [vmem:[%s3417_s26 + $0x20] sm:$0xff] }
  0x71   : > { %vm1714_vm1 = vcmp.ne.f32.partialorder %v1666_v2, 0.0 }
  0x73   : > { %772 = vadd.xlane.f32.xlu1 %v771_v1  ;;  %769 = vadd.xlane.f32.xlu0 %v768_v5  ;;  %v732_v5 = vld [vmem:[%s3413_s11 + $0x28] sm:$0xff] }
  0x74   : > { %vm788_vm9 = vcmp.ne.f32.partialorder %v732_v5, 0.0 }
  0x77   : > { %1682 = vadd.xlane.f32.xlu1 %v1681_v9  ;;  %1679 = vadd.xlane.f32.xlu0 %v1678_v13 }
  0x7b   : > { %1688 = vadd.xlane.f32.xlu1 %v1687_v18  ;;  %1685 = vadd.xlane.f32.xlu0 %v1684_v20 }
  0x7f   : > { %1694 = vadd.xlane.f32.xlu1 %v1693_v22  ;;  %1691 = vadd.xlane.f32.xlu0 %v1690_v24 }
  0x83   : > { %1700 = vadd.xlane.f32.xlu1 %v1699_v26  ;;  %1697 = vadd.xlane.f32.xlu0 %v1696_v27  ;;  %v734_v27 = vld [vmem:[%s3413_s11 + $0x38] sm:$0xff]  ;;  %s2610_s11 = sld [smem:[#allocation6]] (!%p2810_p4) }
  0x84   : > { %vm790_vm13 = vcmp.ne.f32.partialorder %v734_v27, 0.0 }
  0xf0   : > { %v758_v30 = vpop.xlane.xlu1 %757  ;;  %v752_v31 = vpop.xlane.xlu0 %751 }
  0xf1   : > { %v775_v32 = vadd.f32 %v3531_v29, %v752_v31  ;;  %v777_v47 = vadd.f32 %v3531_v29, %v758_v30 }
  0xf3   : > { %v3535_v34 = vsel %vm783_vm3, %v775_v32, -1e+30  ;;  %v3546_v56 = vsel %vm785_vm5, %v777_v47, -1e+30  ;;  %vm870_vm5 = vcmask 1042434  }
  0xf4   : > { %v761_v45 = vpop.xlane.xlu1 %760  ;;  %811 = vperm.xlu0 %3064, %v3535_v34   ;;  %v755_v46 = vpop.xlane.xlu0 %754 }
  0xf5   : > { %v776_v49 = vadd.f32 %v3531_v29, %v755_v46  ;;  %v778_v54 = vadd.f32 %v3531_v29, %v761_v45  ;;  %v1662_v46 = vld [vmem:[%s3417_s26] sm:$0xff] }
  0xf6   : > { %vm1710_vm15 = vcmp.ne.f32.partialorder %v1662_v46, 0.0 }
  0xf7   : > { %v3541_v50 = vsel %vm784_vm4, %v776_v49, -1e+30  ;;  %v3550_v62 = vsel %vm786_vm6, %v778_v54, -1e+30  ;;  %vm868_vm4 = vcmask 1041409   ;;  %vm872_vm6 = vcmask 1043459  }
  0xf8   : > { %v767_v53 = vpop.xlane.xlu1 %766  ;;  %814 = vperm.xlu1 %3065, %v3541_v50   ;;  %v764_v58 = vpop.xlane.xlu0 %763 }
  0xf9   : > { %v779_v1 = vadd.f32 %v3531_v29, %v764_v58  ;;  %v780_v9 = vadd.f32 %v3531_v29, %v767_v53  ;;  %v1664_v58 = vld [vmem:[%s3417_s26 + $0x10] sm:$0xff] }
  0xfa   : > { %vm1712_vm0 = vcmp.ne.f32.partialorder %v1664_v58, 0.0 }
  0xfb   : > { %v3558_v13 = vsel %vm787_vm7, %v779_v1, -1e+30  ;;  %v3567_v23 = vsel %vm788_vm9, %v780_v9, -1e+30  ;;  %v1668_v9 = vld [vmem:[%s3417_s26 + $0x30] sm:$0xff]  ;;  %vm874_vm7 = vcmask 1044484  }
  0xfc   : > { %v773_v61 = vpop.xlane.xlu1 %772  ;;  %817 = vperm.xlu1 %3065, %v3546_v56   ;;  %v770_v8 = vpop.xlane.xlu0 %769  ;;  %vm1716_vm3 = vcmp.ne.f32.partialorder %v1668_v9, 0.0  ;;  %vm878_vm9 = vcmask 1046534  }
  0xfd   : > { %v781_v24 = vadd.f32 %v3531_v29, %v770_v8  ;;  %v782_v30 = vadd.f32 %v3531_v29, %v773_v61 }
  0xff   : > { %v3578_v32 = vsel %vm789_vm11, %v781_v24, -1e+30  ;;  %v3587_v51 = vsel %vm790_vm13, %v782_v30, -1e+30  ;;  %vm883_vm11 = vcmask 64512   ;;  %vm3221_vm13 = vmmov 0  }
 0x100   : > { %v1683_v6 = vpop.xlane.xlu1 %1682  ;;  %820 = vperm.xlu1 %3065, %v3550_v62   ;;  %v1680_v21 = vpop.xlane.xlu0 %1679 }
 0x101   : > { %v1703_v11 = vadd.f32 %v1683_v6, %v3531_v29  ;;  %v1702_v53 = vadd.f32 %v1680_v21, %v3531_v29 }
 0x103   : > { %v3561_v18 = vsel %vm1711_vm8, %v1703_v11, -1e+30  ;;  %v3595_v61 = vsel %vm1710_vm15, %v1702_v53, -1e+30  ;;  %vm876_vm8 = vcmask 1045509  }
 0x104   : > { %v1689_v20 = vpop.xlane.xlu1 %1688  ;;  %1744 = vperm.xlu0 %3064, %v3561_v18   ;;  %823 = vperm.xlu1 %3065, %v3558_v13   ;;  %v1686_v44 = vpop.xlane.xlu0 %1685 }
 0x105   : > { %v1705_v22 = vadd.f32 %v1689_v20, %v3531_v29  ;;  %v1704_v1 = vadd.f32 %v1686_v44, %v3531_v29 }
 0x107   : > { %v3571_v26 = vsel %vm1713_vm10, %v1705_v22, -1e+30  ;;  %v3600_v5 = vsel %vm1712_vm0, %v1704_v1, -1e+30  ;;  %v834_v22 = vlaneseq  ;;  %vm880_vm10 = vcmask 1047559  }
 0x108   : > { %v1695_v28 = vpop.xlane.xlu1 %1694  ;;  %1750 = vperm.xlu0 %3064, %v3571_v26   ;;  %826 = vperm.xlu1 %3065, %v3567_v23   ;;  %v1692_v60 = vpop.xlane.xlu0 %1691 }
 0x109   : > { %v1707_v31 = vadd.f32 %v1695_v28, %v3531_v29  ;;  %v1706_v6 = vadd.f32 %v1692_v60, %v3531_v29  ;;  %v835_v25 = vand.u32 127, %v834_v22  ;;  %v3612_v27 = vshrl.u32 %v834_v22, 7 }
 0x10b   : > { %v3581_v45 = vsel %vm1715_vm12, %v1707_v31, -1e+30  ;;  %v3605_v11 = vsel %vm1714_vm1, %v1706_v6, -1e+30  ;;  %v3615_v30 = vsub.s32 %v835_v25, %v3612_v27  ;;  %vm1599_vm12 = vcmask 7168  }
 0x10c   : > { %v1701_v47 = vpop.xlane.xlu1 %1700  ;;  %1756 = vperm.xlu0 %3064, %v3581_v45   ;;  %829 = vperm.xlu1 %3065, %v3578_v32   ;;  %v1698_v8 = vpop.xlane.xlu0 %1697 }
 0x10d   : > { %v1709_v49 = vadd.f32 %v1701_v47, %v3531_v29  ;;  %v1708_v14 = vadd.f32 %v1698_v8, %v3531_v29 }
 0x10f   : > { %v3590_v54 = vsel %vm1717_vm14, %v1709_v49, -1e+30  ;;  %v3609_v19 = vsel %vm1716_vm3, %v1708_v14, -1e+30 }
 0x110   : > { %1762 = vperm.xlu0 %3064, %v3590_v54   ;;  %832 = vperm.xlu1 %3065, %v3587_v51  }
 0x114   : > { %1741 = vperm.xlu1 %3065, %v3595_v61  }
 0x118   : > { %1747 = vperm.xlu1 %3065, %v3600_v5  }
 0x11c   : > { %1753 = vperm.xlu1 %3065, %v3605_v11  }
 0x120   : > { %1759 = vperm.xlu1 %3065, %v3609_v19  }
 0x16f   : > { %v812_v31 = vpop.permute.xlu0 %811 }
 0x170   : > { %v839_v46 = vrot.slane %v812_v31, %v3615_v30 }
 0x173   : > { %v815_v20 = vpop.permute.xlu1 %814 }
 0x174   : > { %v843_v33 = vrot.slane %v815_v20, %v3615_v30 }
 0x176   : > { %v869_v58 = vsel %vm868_vm4, %v843_v33, %v839_v46 }
 0x177   : > { %v818_v21 = vpop.permute.xlu1 %817 }
 0x178   : > { %v847_v44 = vrot.slane %v818_v21, %v3615_v30 }
 0x17a   : > { %v871_v2 = vsel %vm870_vm5, %v847_v44, %v869_v58 }
 0x17b   : > { %v821_v24 = vpop.permute.xlu1 %820 }
 0x17c   : > { %v851_v47 = vrot.slane %v821_v24, %v3615_v30 }
 0x17e   : > { %v873_v8 = vsel %vm872_vm6, %v851_v47, %v871_v2 }
 0x17f   : > { %v824_v28 = vpop.permute.xlu1 %823  ;;  %v1745_v60 = vpop.permute.xlu0 %1744 }
 0x180   : > { %v855_v49 = vrot.slane %v824_v28, %v3615_v30  ;;  %v1771_v33 = vrot.slane %v1745_v60, %v3615_v30 }
 0x182   : > { %v875_v9 = vsel %vm874_vm7, %v855_v49, %v873_v8 }
 0x183   : > { %v827_v29 = vpop.permute.xlu1 %826  ;;  %v1751_v24 = vpop.permute.xlu0 %1750 }
 0x184   : > { %v859_v1 = vrot.slane %v827_v29, %v3615_v30  ;;  %v1779_v58 = vrot.slane %v1751_v24, %v3615_v30 }
 0x186   : > { %v877_v20 = vsel %vm876_vm8, %v859_v1, %v875_v9 }
 0x187   : > { %v830_v53 = vpop.permute.xlu1 %829  ;;  %v1757_v46 = vpop.permute.xlu0 %1756 }
 0x188   : > { %v863_v6 = vrot.slane %v830_v53, %v3615_v30  ;;  %v1787_v60 = vrot.slane %v1757_v46, %v3615_v30  ;;  %v3659_v46 = vld [vmem:[#allocation2 + $0x8] sm:$0xff] }
 0x18a   : > { %v879_v22 = vsel %vm878_vm9, %v863_v6, %v877_v20 }
 0x18b   : > { %v833_v14 = vpop.permute.xlu1 %832  ;;  %v1763_v8 = vpop.permute.xlu0 %1762 }
 0x18c   : > { %v867_v21 = vrot.slane %v833_v14, %v3615_v30 }
 0x18e   : > { %v881_v25 = vsel %vm880_vm10, %v867_v21, %v879_v22  ;;  %v1795_v21 = vrot.slane %v1763_v8, %v3615_v30  ;;  %v913_v8 = vsub.s32 4, %v3612_v27 }
 0x18f   : > { %v1742_v28 = vpop.permute.xlu1 %1741  ;;  %v884_v31 = vsel %vm883_vm11, %v881_v25, -inf }
 0x190   : > { %885 = vmax.xlane.f32.xlu1 %v884_v31  ;;  %v1767_v29 = vrot.slane %v1742_v28, %v3615_v30  ;;  %v3649_v31 = vld [vmem:[#allocation2] sm:$0xff] }
 0x192   : > { %v1796_v49 = vsel %vm868_vm4, %v1771_v33, %v1767_v29 }
 0x193   : > { %v1748_v44 = vpop.permute.xlu1 %1747 }
 0x194   : > { %v1775_v47 = vrot.slane %v1748_v44, %v3615_v30 }
 0x196   : > { %v1797_v53 = vsel %vm870_vm5, %v1775_v47, %v1796_v49 }
 0x197   : > { %v1754_v1 = vpop.permute.xlu1 %1753  ;;  %v1798_v6 = vsel %vm872_vm6, %v1779_v58, %v1797_v53  ;;  %v897_v58 = vsub.s32 0, %v3612_v27 }
 0x198   : > { %v1783_v2 = vrot.slane %v1754_v1, %v3615_v30  ;;  %v901_v1 = vsub.s32 1, %v3612_v27 }
 0x19a   : > { %v1799_v9 = vsel %vm874_vm7, %v1783_v2, %v1798_v6  ;;  %v905_v2 = vsub.s32 2, %v3612_v27  ;;  %v909_v6 = vsub.s32 3, %v3612_v27 }
 0x19b   : > { %v1760_v14 = vpop.permute.xlu1 %1759  ;;  %v1800_v22 = vsel %vm876_vm8, %v1787_v60, %v1799_v9  ;;  %v917_v9 = vsub.s32 5, %v3612_v27  ;;  %v921_v60 = vsub.s32 6, %v3612_v27 }
 0x19c   : > { %v1791_v20 = vrot.slane %v1760_v14, %v3615_v30 }
 0x19e   : > { %v1801_v25 = vsel %vm878_vm9, %v1791_v20, %v1800_v22 }
 0x19f   : > { %v1802_v24 = vsel %vm880_vm10, %v1795_v21, %v1801_v25 }
 0x1a0   : > { %v1804_v28 = vsel %vm883_vm11, %v1802_v24, -inf  ;;  %v925_v24 = vsub.s32 7, %v3612_v27 }
 0x1a1   : > { %1805 = vmax.xlane.f32.xlu0 %v1804_v28 }
 0x219   : > { %v886_v29 = vpop.xlane.xlu1 %885 }
 0x21a   : > { %v3652_v33 = vmax.f32 %v3649_v31, %v886_v29 }
 0x21c   : > { %v888_v44 = vsub.f32 %v3649_v31, %v3652_v33  ;;  %1600 = vst.msk [vmem:[#allocation2] sm:$0xff] %vm1599_vm12, %v3652_v33  ;;  %893 = vperm.xlu0 %3064, %v3652_v33  }
 0x22a   : > { %v1806_v47 = vpop.xlane.xlu0 %1805 }
 0x22b   : > { %v3662_v49 = vmax.f32 %v3659_v46, %v1806_v47 }
 0x22d   : > { %2519 = vst.msk [vmem:[#allocation2 + $0x8] sm:$0xff] %vm1599_vm12, %v3662_v49  ;;  %1813 = vperm.xlu1 %3065, %v3662_v49  }
 0x297   : > { %v894_v14 = vpop.permute.xlu0 %893 }
 0x298   : > { %v898_v20 = vrot.slane %v894_v14, %v897_v58  ;;  %v902_v21 = vrot.slane %v894_v14, %v901_v1  ;;  %v906_v22 = vrot.slane %v894_v14, %v905_v2  ;;  %v910_v25 = vrot.slane %v894_v14, %v909_v6 }
 0x299   : > { %v914_v28 = vrot.slane %v894_v14, %v913_v8  ;;  %v918_v17 = vrot.slane %v894_v14, %v917_v9  ;;  %v922_v15 = vrot.slane %v894_v14, %v921_v60  ;;  %v926_v59 = vrot.slane %v894_v14, %v925_v24 }
 0x29a   : > { %v935_v29 = vsub.f32 %v3535_v34, %v898_v20  ;;  %v936_v47 = vsub.f32 %v3541_v50, %v902_v21  ;;  %v937_v16 = vsub.f32 %v3546_v56, %v906_v22  ;;  %v938_v10 = vsub.f32 %v3550_v62, %v910_v25 }
 0x29b   : > { %v939_v53 = vsub.f32 %v3558_v13, %v914_v28  ;;  %v940_v27 = vsub.f32 %v3567_v23, %v918_v17  ;;  %v941_v34 = vsub.f32 %v3578_v32, %v922_v15  ;;  %v942_v50 = vsub.f32 %v3587_v51, %v926_v59 }
 0x29c   : > { %v943_v3 = vmul.f32 1.442695, %v935_v29  ;;  %v945_v7 = vmul.f32 1.442695, %v936_v47  ;;  %v947_v63 = vmul.f32 1.442695, %v937_v16 }
 0x29d   : > { %v949_v52 = vmul.f32 1.442695, %v938_v10  ;;  %v951_v56 = vmul.f32 1.442695, %v939_v53  ;;  %v953_v62 = vmul.f32 1.442695, %v940_v27 }
 0x29e   : > { %3066 = vpow2.f32 %v943_v3  ;;  %v955_v20 = vmul.f32 1.442695, %v941_v34  ;;  %v957_v21 = vmul.f32 1.442695, %v942_v50 }
 0x29f   : > { %3068 = vpow2.f32 %v945_v7 }
 0x2a0   : > { %3070 = vpow2.f32 %v947_v63 }
 0x2a1   : > { %3072 = vpow2.f32 %v949_v52 }
 0x2a2   : > { %3074 = vpow2.f32 %v951_v56 }
 0x2a3   : > { %3076 = vpow2.f32 %v953_v62 }
 0x2a4   : > { %3078 = vpow2.f32 %v955_v20 }
 0x2a5   : > { %3080 = vpow2.f32 %v957_v21 }
 0x2a8   : > { %v1814_v13 = vpop.permute.xlu1 %1813 }
 0x2a9   : > { %v1818_v3 = vrot.slane %v1814_v13, %v897_v58  ;;  %v1822_v16 = vrot.slane %v1814_v13, %v901_v1  ;;  %v1826_v14 = vrot.slane %v1814_v13, %v905_v2  ;;  %v1830_v17 = vrot.slane %v1814_v13, %v909_v6 }
 0x2aa   : > { %v1834_v10 = vrot.slane %v1814_v13, %v913_v8  ;;  %v1838_v23 = vrot.slane %v1814_v13, %v917_v9  ;;  %v1842_v58 = vrot.slane %v1814_v13, %v921_v60  ;;  %v1846_v1 = vrot.slane %v1814_v13, %v925_v24 }
 0x2ab   : > { %v3067_v7 = vpop.eup %3066  ;;  %v1855_v15 = vsub.f32 %v3595_v61, %v1818_v3  ;;  %v1856_v59 = vsub.f32 %v3561_v18, %v1822_v16  ;;  %v1857_v52 = vsub.f32 %v3600_v5, %v1826_v14  ;;  %v1858_v32 = vsub.f32 %v3571_v26, %v1830_v17 }
 0x2ac   : > { %v3069_v63 = vpop.eup %3068  ;;  %961 = vperm.xlu1 %3065, %v3067_v7   ;;  %v1859_v6 = vsub.f32 %v3605_v11, %v1834_v10  ;;  %v1860_v18 = vsub.f32 %v3581_v45, %v1838_v23  ;;  %v3220_v9 = vmov 0.0   ;;  %v1861_v11 = vsub.f32 %v3609_v19, %v1842_v58 }
 0x2ad   : > { %v1863_v51 = vmul.f32 1.442695, %v1855_v15  ;;  %v1865_v53 = vmul.f32 1.442695, %v1856_v59  ;;  %1041 = vperm.xlu0 %3064, %v3069_v63   ;;  %v3071_v2 = vpop.eup %3070  ;;  %v1867_v8 = vmul.f32 1.442695, %v1857_v52  ;;  %2891 = vmatprep.subr.mxu0 %v3220_v9  ;;  %v1862_v22 = vsub.f32 %v3590_v54, %v1846_v1 }
 0x2ae   : > { %v3073_v61 = vpop.eup %3072  ;;  %v1869_v5 = vmul.f32 1.442695, %v1858_v32  ;;  %2896 = vmatprep.subr.mxu1 %v3220_v9  ;;  %2892 = vmatpush3.msra.mxu0 %v2823_v38  ;;  %v1871_v45 = vmul.f32 1.442695, %v1859_v6  ;;  %v1873_v38 = vmul.f32 1.442695, %v1860_v18  ;;  %v3944_v59 = vunpack.c.h.bf16 %v3454_v48 }
 0x2af   : > { %3082 = vpow2.f32 %v1863_v51  ;;  %2893 = vmatprep.mubr.msk.f32.mxu0 %vm3221_vm13, %v3220_v9  ;;  %v3075_v26 = vpop.eup %3074  ;;  %2897 = vmatpush3.msra.mxu1 %v2824_v40  ;;  %v1875_v24 = vmul.f32 1.442695, %v1861_v11  ;;  %v1877_v36 = vmul.f32 1.442695, %v1862_v22  ;;  %v889_v54 = vmul.f32 1.442695, %v888_v44 }
 0x2b0   : > { %3084 = vpow2.f32 %v1865_v53  ;;  %1121 = vperm.xlu1 %3065, %v3071_v2   ;;  %2898 = vmatprep.mubr.msk.f32.mxu1 %vm3221_vm13, %v3220_v9  ;;  %v3077_v60 = vpop.eup %3076  ;;  %v3945_v48 = vunpack.c.l.bf16 %v3465_v55  ;;  %v3946_v32 = vsub.f32 %v3659_v46, %v3662_v49  ;;  %v3947_v53 = vunpack.c.h.bf16 %v3465_v55 }
 0x2b1   : > { %1201 = vperm.xlu0 %3064, %v3073_v61   ;;  %3086 = vpow2.f32 %v1867_v8  ;;  %2901 = vmatprep.subr.mxu0 %v3220_v9  ;;  %v3079_v25 = vpop.eup %3078  ;;  %v3948_v55 = vunpack.c.l.bf16 %v3482_v0  ;;  %v3949_v49 = vunpack.c.h.bf16 %v3482_v0  ;;  %v3950_v0 = vunpack.c.l.bf16 %v3490_v4 }
 0x2b2   : > { %3088 = vpow2.f32 %v1869_v5  ;;  %2906 = vmatprep.subr.mxu1 %v3220_v9  ;;  %v3081_v19 = vpop.eup %3080  ;;  %v1809_v51 = vmul.f32 1.442695, %v3946_v32 }
 0x2b3   : > { %3090 = vpow2.f32 %v1871_v45 }
 0x2b4   : > { %1281 = vperm.xlu1 %3065, %v3075_v26   ;;  %3092 = vpow2.f32 %v1873_v38 }
 0x2b5   : > { %1361 = vperm.xlu0 %3064, %v3077_v60   ;;  %3094 = vpow2.f32 %v1875_v24  ;;  %v3951_v60 = vunpack.c.h.bf16 %v3490_v4  ;;  %v3952_v4 = vunpack.c.l.bf16 %v3503_v12 }
 0x2b6   : > { %3096 = vpow2.f32 %v1877_v36 }
 0x2b7   : > { %3098 = vpow2.f32 %v889_v54 }
 0x2b8   : > { %1441 = vperm.xlu1 %3065, %v3079_v25   ;;  %3100 = vpow2.f32 %v1809_v51  ;;  %v801_v51 = vld [vmem:[#allocation4] sm:$0xff] }
 0x2b9   : > { %1521 = vperm.xlu0 %3064, %v3081_v19  }
 0x2bc   : > { %v3083_v40 = vpop.eup %3082 }
 0x2bd   : > { %v3085_v28 = vpop.eup %3084  ;;  %1881 = vperm.xlu1 %3065, %v3083_v40   ;;  %v3953_v40 = vunpack.c.h.bf16 %v3503_v12 }
 0x2be   : > { %1961 = vperm.xlu0 %3064, %v3085_v28   ;;  %v3087_v29 = vpop.eup %3086 }
 0x2bf   : > { %v3089_v47 = vpop.eup %3088 }
 0x2c0   : > { %v3091_v27 = vpop.eup %3090 }
 0x2c1   : > { %2041 = vperm.xlu1 %3065, %v3087_v29   ;;  %v3093_v34 = vpop.eup %3092 }
 0x2c2   : > { %2121 = vperm.xlu0 %3064, %v3089_v47   ;;  %v3095_v50 = vpop.eup %3094 }
 0x2c3   : > { %v3097_v56 = vpop.eup %3096 }
 0x2c4   : > { %v3708_v62 = vpop.eup %3098 }
 0x2c5   : > { %2201 = vperm.xlu1 %3065, %v3091_v27  }
 0x2c6   : > { %2281 = vperm.xlu0 %3064, %v3093_v34   ;;  %v3101_v34 = vpop.eup %3100 }
 0x2c9   : > { %2361 = vperm.xlu1 %3065, %v3095_v50  }
 0x2ca   : > { %2441 = vperm.xlu0 %3064, %v3097_v56   ;;  %v800_v56 = vld [vmem:[#allocation3] sm:$0xff] }
 0x2ce   : > { %1617 = vperm.xlu0 %3064, %v3708_v62  }
 0x327   : > { %v962_v31 = vpop.permute.xlu1 %961 }
 0x328   : > { %v1042_v33 = vpop.permute.xlu0 %1041  ;;  %v966_v44 = vrot.slane %v962_v31, %v3615_v30 }
 0x329   : > { %v1046_v20 = vrot.slane %v1042_v33, %v3615_v30 }
 0x32a   : > { %2894 = vmatmul.mubr.msk.f32.vlgmr.msra.gmra.mxu0 %vm883_vm11, %v966_v44 }
 0x32b   : > { %2899 = vmatmul.mubr.msk.f32.vlgmr.msra.gmra.mxu1 %vm883_vm11, %v1046_v20  ;;  %2902 = vmatpush3.msra.mxu0 %v2827_v37  ;;  %v1122_v21 = vpop.permute.xlu1 %1121  ;;  %v1602_v16 = vsel %vm868_vm4, %v1046_v20, %v966_v44  ;;  %v1729_v44 = vld [vmem:[#allocation3 + $0x8] sm:$0xff] }
 0x32c   : > { %v1202_v13 = vpop.permute.xlu0 %1201  ;;  %v1126_v3 = vrot.slane %v1122_v21, %v3615_v30  ;;  %2907 = vmatpush3.msra.mxu1 %v2828_v39  ;;  %2903 = vmatprep.mubr.msk.f32.mxu0 %vm3221_vm13, %v3220_v9  ;;  %v2520_v20 = vmul.f32 %v3101_v34, %v1729_v44 }
 0x32d   : > { %v1206_v14 = vrot.slane %v1202_v13, %v3615_v30  ;;  %2908 = vmatprep.mubr.msk.f32.mxu1 %vm3221_vm13, %v3220_v9  ;;  %2911 = vmatprep.subr.mxu0 %v3220_v9 }
 0x32e   : > { %v1603_v37 = vsel %vm870_vm5, %v1126_v3, %v1602_v16  ;;  %2904 = vmatmul.mubr.msk.f32.vlgmr.msra.gmra.mxu0 %vm883_vm11, %v1126_v3  ;;  %2916 = vmatprep.subr.mxu1 %v3220_v9 }
 0x32f   : > { %2909 = vmatmul.mubr.msk.f32.vlgmr.msra.gmra.mxu1 %vm883_vm11, %v1206_v14  ;;  %2912 = vmatpush3.msra.mxu0 %v2831_v43  ;;  %v1282_v35 = vpop.permute.xlu1 %1281  ;;  %v1604_v10 = vsel %vm872_vm6, %v1206_v14, %v1603_v37 }
 0x330   : > { %v1362_v39 = vpop.permute.xlu0 %1361  ;;  %v1286_v17 = vrot.slane %v1282_v35, %v3615_v30  ;;  %2917 = vmatpush3.msra.mxu1 %v2832_v42  ;;  %2913 = vmatprep.mubr.msk.f32.mxu0 %vm3221_vm13, %v3220_v9 }
 0x331   : > { %v1366_v7 = vrot.slane %v1362_v39, %v3615_v30  ;;  %2918 = vmatprep.mubr.msk.f32.mxu1 %vm3221_vm13, %v3220_v9  ;;  %2921 = vmatprep.subr.mxu0 %v3220_v9 }
 0x332   : > { %v1605_v43 = vsel %vm874_vm7, %v1286_v17, %v1604_v10  ;;  %2914 = vmatmul.mubr.msk.f32.vlgmr.msra.gmra.mxu0 %vm883_vm11, %v1286_v17  ;;  %2926 = vmatprep.subr.mxu1 %v3220_v9 }
 0x333   : > { %2919 = vmatmul.mubr.msk.f32.vlgmr.msra.gmra.mxu1 %vm883_vm11, %v1366_v7  ;;  %2922 = vmatpush3.msra.mxu0 %v2835_v57  ;;  %v1442_v41 = vpop.permute.xlu1 %1441  ;;  %v1606_v63 = vsel %vm876_vm8, %v1366_v7, %v1605_v43 }
 0x334   : > { %v1522_v42 = vpop.permute.xlu0 %1521  ;;  %v1446_v15 = vrot.slane %v1442_v41, %v3615_v30  ;;  %2927 = vmatpush3.msra.mxu1 %v3944_v59  ;;  %2923 = vmatprep.mubr.msk.f32.mxu0 %vm3221_vm13, %v3220_v9 }
 0x335   : > { %v1526_v52 = vrot.slane %v1522_v42, %v3615_v30  ;;  %2928 = vmatprep.mubr.msk.f32.mxu1 %vm3221_vm13, %v3220_v9  ;;  %2931 = vmatprep.subr.mxu0 %v3220_v9 }
 0x336   : > { %2924 = vmatmul.mubr.msk.f32.vlgmr.msra.gmra.mxu0 %vm883_vm11, %v1446_v15  ;;  %2936 = vmatprep.subr.mxu1 %v3220_v9  ;;  %v1607_v57 = vsel %vm878_vm9, %v1446_v15, %v1606_v63 }
 0x337   : > { %2929 = vmatmul.mubr.msk.f32.vlgmr.msra.gmra.mxu1 %vm883_vm11, %v1526_v52  ;;  %2932 = vmatpush3.msra.mxu0 %v3945_v48  ;;  %v1608_v23 = vsel %vm880_vm10, %v1526_v52, %v1607_v57 }
 0x338   : > { %2937 = vmatpush3.msra.mxu1 %v3947_v53  ;;  %v1882_v58 = vpop.permute.xlu1 %1881  ;;  %v1610_v1 = vsel %vm883_vm11, %v1608_v23, 0.0  ;;  %2933 = vmatprep.mubr.msk.f32.mxu0 %vm3221_vm13, %v3220_v9 }
 0x339   : > { %v1962_v2 = vpop.permute.xlu0 %1961  ;;  %v1886_v6 = vrot.slane %v1882_v58, %v3615_v30  ;;  %1611 = vadd.xlane.f32.xlu1 %v1610_v1  ;;  %2938 = vmatprep.mubr.msk.f32.mxu1 %vm3221_vm13, %v3220_v9 }
 0x33a   : > { %v1966_v8 = vrot.slane %v1962_v2, %v3615_v30  ;;  %2941 = vmatprep.subr.mxu0 %v3220_v9  ;;  %2946 = vmatprep.subr.mxu1 %v3220_v9 }
 0x33b   : > { %2934 = vmatmul.mubr.msk.f32.vlgmr.msra.gmra.mxu0 %vm883_vm11, %v1886_v6 }
 0x33c   : > { %2939 = vmatmul.mubr.msk.f32.vlgmr.msra.gmra.mxu1 %vm883_vm11, %v1966_v8  ;;  %2942 = vmatpush3.msra.mxu0 %v3948_v55  ;;  %v2042_v46 = vpop.permute.xlu1 %2041  ;;  %v2521_v5 = vsel %vm868_vm4, %v1966_v8, %v1886_v6 }
 0x33d   : > { %2947 = vmatpush3.msra.mxu1 %v3949_v49  ;;  %v2122_v61 = vpop.permute.xlu0 %2121  ;;  %v2046_v18 = vrot.slane %v2042_v46, %v3615_v30  ;;  %2943 = vmatprep.mubr.msk.f32.mxu0 %vm3221_vm13, %v3220_v9 }
 0x33e   : > { %v2126_v26 = vrot.slane %v2122_v61, %v3615_v30  ;;  %2948 = vmatprep.mubr.msk.f32.mxu1 %vm3221_vm13, %v3220_v9  ;;  %2951 = vmatprep.subr.mxu0 %v3220_v9 }
 0x33f   : > { %v2522_v11 = vsel %vm870_vm5, %v2046_v18, %v2521_v5  ;;  %2944 = vmatmul.mubr.msk.f32.vlgmr.msra.gmra.mxu0 %vm883_vm11, %v2046_v18  ;;  %2956 = vmatprep.subr.mxu1 %v3220_v9 }
 0x340   : > { %2949 = vmatmul.mubr.msk.f32.vlgmr.msra.gmra.mxu1 %vm883_vm11, %v2126_v26  ;;  %2952 = vmatpush3.msra.mxu0 %v3950_v0  ;;  %v2202_v45 = vpop.permute.xlu1 %2201  ;;  %v2523_v19 = vsel %vm872_vm6, %v2126_v26, %v2522_v11 }
 0x341   : > { %2957 = vmatpush3.msra.mxu1 %v3951_v60  ;;  %v2282_v22 = vpop.permute.xlu0 %2281  ;;  %v2206_v38 = vrot.slane %v2202_v45, %v3615_v30  ;;  %2953 = vmatprep.mubr.msk.f32.mxu0 %vm3221_vm13, %v3220_v9 }
 0x342   : > { %v2286_v25 = vrot.slane %v2282_v22, %v3615_v30  ;;  %2958 = vmatprep.mubr.msk.f32.mxu1 %vm3221_vm13, %v3220_v9  ;;  %2961 = vmatprep.subr.mxu0 %v3220_v9 }
 0x343   : > { %v2524_v24 = vsel %vm874_vm7, %v2206_v38, %v2523_v19  ;;  %2954 = vmatmul.mubr.msk.f32.vlgmr.msra.gmra.mxu0 %vm883_vm11, %v2206_v38  ;;  %2966 = vmatprep.subr.mxu1 %v3220_v9 }
 0x344   : > { %2959 = vmatmul.mubr.msk.f32.vlgmr.msra.gmra.mxu1 %vm883_vm11, %v2286_v25  ;;  %2962 = vmatpush3.msra.mxu0 %v3952_v4  ;;  %v2362_v36 = vpop.permute.xlu1 %2361  ;;  %v2525_v47 = vsel %vm876_vm8, %v2286_v25, %v2524_v24 }
 0x345   : > { %2967 = vmatpush3.msra.mxu1 %v3953_v40  ;;  %v2442_v54 = vpop.permute.xlu0 %2441  ;;  %v2366_v28 = vrot.slane %v2362_v36, %v3615_v30  ;;  %2963 = vmatprep.mubr.msk.f32.mxu0 %vm3221_vm13, %v3220_v9 }
 0x346   : > { %v2446_v29 = vrot.slane %v2442_v54, %v3615_v30  ;;  %2968 = vmatprep.mubr.msk.f32.mxu1 %vm3221_vm13, %v3220_v9  ;;  %v1601_v30 = vmul.f32 %v3708_v62, %v800_v56 }
 0x347   : > { %2964 = vmatmul.mubr.msk.f32.vlgmr.msra.gmra.mxu0 %vm883_vm11, %v2366_v28  ;;  %v2526_v27 = vsel %vm878_vm9, %v2366_v28, %v2525_v47 }
 0x348   : > { %2969 = vmatmul.mubr.msk.f32.vlgmr.msra.gmra.mxu1 %vm883_vm11, %v2446_v29  ;;  %v2527_v12 = vsel %vm880_vm10, %v2446_v29, %v2526_v27 }
 0x349   : > { %v2529_v50 = vsel %vm883_vm11, %v2527_v12, 0.0  ;;  %v1618_v33 = vpop.permute.xlu0 %1617 }
 0x34a   : > { %2536 = vperm.xlu1 %3065, %v3101_v34   ;;  %2530 = vadd.xlane.f32.xlu0 %v2529_v50  ;;  %v1620_v55 = vmul.f32 %v1618_v33, %v801_v51  ;;  %v1731_v50 = vld [vmem:[#allocation4 + $0x8] sm:$0xff] }
 0x3c2   : > { %v1612_v31 = vpop.xlane.xlu1 %1611 }
 0x3c3   : > { %v1613_v9 = vadd.f32 %v1612_v31, %v1601_v30 }
 0x3c5   : > { %1614 = vst.msk [vmem:[#allocation3] sm:$0xff] %vm1599_vm12, %v1613_v9 }
 0x3c6   : > { %v2537_v56 = vpop.permute.xlu1 %2536 }
 0x3d3   : > { %v2531_v21 = vpop.xlane.xlu0 %2530 }
 0x3d4   : > { %v2532_v13 = vadd.f32 %v2531_v21, %v2520_v20  ;;  %v2539_v21 = vmul.f32 %v2537_v56, %v1731_v50 }
 0x3d6   : > { %2533 = vst.msk [vmem:[#allocation3 + $0x8] sm:$0xff] %vm1599_vm12, %v2532_v13 }
 0x3ea   : > { %v1035_v3 = vpop.f32.mrf.mxu0 }
 0x3eb   : > { %v1115_v16 = vpop.f32.mrf.mxu1 }
 0x3ec   : > { %v1629_v14 = vrot.slane %v1115_v16, 7  ;;  %v2895_v37 = vpop.f32.mrf.mxu0 }
 0x3ed   : > { %v2900_v35 = vpop.f32.mrf.mxu1 }
 0x3ee   : > { %v1195_v39 = vpop.f32.mrf.mxu0  ;;  %v1630_v62 = vsel %vm868_vm4, %v1629_v14, %v1035_v3 }
 0x3ef   : > { %v1631_v17 = vrot.slane %v1195_v39, 6  ;;  %v1275_v7 = vpop.f32.mrf.mxu1 }
 0x3f0   : > { %v1633_v10 = vrot.slane %v1275_v7, 5  ;;  %v2905_v43 = vpop.f32.mrf.mxu0 }
 0x3f1   : > { %v1632_v41 = vsel %vm870_vm5, %v1631_v17, %v1630_v62  ;;  %v2910_v42 = vpop.f32.mrf.mxu1 }
 0x3f2   : > { %v1355_v15 = vpop.f32.mrf.mxu0  ;;  %v1634_v63 = vsel %vm872_vm6, %v1633_v10, %v1632_v41 }
 0x3f3   : > { %v1635_v59 = vrot.slane %v1355_v15, 4  ;;  %v1435_v52 = vpop.f32.mrf.mxu1 }
 0x3f4   : > { %v1637_v57 = vrot.slane %v1435_v52, 3  ;;  %v2915_v48 = vpop.f32.mrf.mxu0 }
 0x3f5   : > { %v1636_v23 = vsel %vm874_vm7, %v1635_v59, %v1634_v63  ;;  %v2920_v32 = vpop.f32.mrf.mxu1 }
 0x3f6   : > { %v1515_v53 = vpop.f32.mrf.mxu0  ;;  %v1638_v2 = vsel %vm876_vm8, %v1637_v57, %v1636_v23 }
 0x3f7   : > { %v1639_v58 = vrot.slane %v1515_v53, 2  ;;  %v1595_v1 = vpop.f32.mrf.mxu1 }
 0x3f8   : > { %v1641_v6 = vrot.slane %v1595_v1, 1  ;;  %v2925_v8 = vpop.f32.mrf.mxu0 }
 0x3f9   : > { %v1640_v46 = vsel %vm878_vm9, %v1639_v58, %v1638_v2  ;;  %v2930_v49 = vpop.f32.mrf.mxu1 }
 0x3fa   : > { %v1642_v61 = vsel %vm880_vm10, %v1641_v6, %v1640_v46 }
 0x3fb   : > { %v1644_v18 = vadd.f32 %v1642_v61, %v1620_v55  ;;  %v1955_v5 = vpop.f32.mrf.mxu0 }
 0x3fc   : > { %v2035_v26 = vpop.f32.mrf.mxu1 }
 0x3fd   : > { %1645 = vst.msk [vmem:[#allocation4] sm:$0xff] %vm749_vm2, %v1644_v18  ;;  %v2548_v11 = vrot.slane %v2035_v26, 7  ;;  %v2935_v0 = vpop.f32.mrf.mxu0 }
 0x3fe   : > { %v2940_v45 = vpop.f32.mrf.mxu1 }
 0x3ff   : > { %v2115_v60 = vpop.f32.mrf.mxu0  ;;  %v2549_v25 = vsel %vm868_vm4, %v2548_v11, %v1955_v5 }
 0x400   : > { %v2550_v22 = vrot.slane %v2115_v60, 6  ;;  %v2195_v38 = vpop.f32.mrf.mxu1 }
 0x401   : > { %v2552_v19 = vrot.slane %v2195_v38, 5  ;;  %v2945_v24 = vpop.f32.mrf.mxu0 }
 0x402   : > { %v2551_v4 = vsel %vm870_vm5, %v2550_v22, %v2549_v25  ;;  %v2950_v36 = vpop.f32.mrf.mxu1 }
 0x403   : > { %v2275_v40 = vpop.f32.mrf.mxu0  ;;  %v2553_v29 = vsel %vm872_vm6, %v2552_v19, %v2551_v4 }
 0x404   : > { %v2554_v54 = vrot.slane %v2275_v40, 4  ;;  %v2355_v28 = vpop.f32.mrf.mxu1 }
 0x405   : > { %v2556_v47 = vrot.slane %v2355_v28, 3  ;;  %v2955_v27 = vpop.f32.mrf.mxu0 }
 0x406   : > { %v2555_v12 = vsel %vm874_vm7, %v2554_v54, %v2553_v29  ;;  %v2960_v34 = vpop.f32.mrf.mxu1 }
 0x407   : > { %v2435_v30 = vpop.f32.mrf.mxu0  ;;  %v2557_v33 = vsel %vm876_vm8, %v2556_v47, %v2555_v12 }
 0x408   : > { %v2558_v31 = vrot.slane %v2435_v30, 2  ;;  %v2515_v9 = vpop.f32.mrf.mxu1 }
 0x409   : > { %v2560_v44 = vrot.slane %v2515_v9, 1  ;;  %v2965_v20 = vpop.f32.mrf.mxu0 }
 0x40a   : > { %v2559_v13 = vsel %vm878_vm9, %v2558_v31, %v2557_v33  ;;  %v2970_v3 = vpop.f32.mrf.mxu1  ;;  %2568 = sbr.rel (%p2810_p4) target bundleno = 1330 (0x532), region = 222 }
 0x40b   : > { %v2561_v16 = vsel %vm880_vm10, %v2560_v44, %v2559_v13 }
 0x40c   : > { %v2563_v14 = vadd.f32 %v2561_v16, %v2539_v21 }
 0x40e   : > { %2564 = vst.msk [vmem:[#allocation4 + $0x8] sm:$0xff] %vm749_vm2, %v2563_v14 }
 0x40f   : > { %v2570_v37 = vld [vmem:[#allocation3] sm:$0xff]  ;;  %v2579_v35 = vld [vmem:[#allocation3 + $0x8] sm:$0xff]  ;;  %v3222_v39 = vmov 0   ;;  %v2569_v62 = vld [vmem:[#allocation4] sm:$0xff]  ;;  %v2611_v51 = vstv %s2610_s11 }
 0x410   : > { %3102 = vset.pattern.permute.xlu0 %v3222_v39  ;;  %3103 = vrcp.f32 %v2570_v37  ;;  %v2811_v43 = vld [vmem:[%s3919_s5] ss:$0 sm:$0xff] }
 0x411   : > { %3105 = vrcp.f32 %v2579_v35  ;;  %v2812_v52 = vld [vmem:[%s3920_s6] ss:$0 sm:$0xff] }
 0x415   : > { %v2578_v42 = vld [vmem:[#allocation4 + $0x8] sm:$0xff] }
 0x41d   : > { %v3104_v17 = vpop.eup %3103 }
 0x41e   : > { %2574 = vperm.xlu0 %3102, %v3104_v17   ;;  %v3106_v7 = vpop.eup %3105 }
 0x422   : > { %2583 = vperm.xlu0 %3102, %v3106_v7  }
 0x499   : > { %v2575_v10 = vpop.permute.xlu0 %2574 }
 0x49a   : > { %v2577_v41 = vmul.f32 %v2575_v10, %v2569_v62 }
 0x49c   : > { %v2594_v15 = vmul.f32 %v2811_v43, %v2577_v41 }
 0x49d   : > { %v2584_v59 = vpop.permute.xlu0 %2583 }
 0x49e   : > { %v2586_v63 = vmul.f32 %v2584_v59, %v2578_v42  ;;  %v2595_v57 = vsel %vm749_vm2, %v2594_v15, 0.0 }
 0x49f   : > { %2596 = vadd.xlane.f32.xlu1 %v2595_v57 }
 0x4a0   : > { %v2605_v48 = vmul.f32 %v2812_v52, %v2586_v63 }
 0x4a2   : > { %v2606_v23 = vsel %vm749_vm2, %v2605_v48, 0.0 }
 0x4a3   : > { %2607 = vadd.xlane.f32.xlu1 %v2606_v23 }
 0x528   : > { %v2597_v32 = vpop.xlane.xlu1 %2596 }
 0x52c   : > { %v2608_v53 = vpop.xlane.xlu1 %2607 }
 0x52d   : > { %v2609_v58 = vadd.f32 %v2608_v53, %v2597_v32 }
 0x52f   : > { %v2612_v1 = vadd.f32 %v2611_v51, %v2609_v58 }
 0x531   : > { %2613 = vst [vmem:[%s692_s30] sm:$0xff] %v2612_v1 }
 0x532 PF: > { %s2814_s22 = sshll.u32 %s3203_s19, 7  ;;  %s2628_s27 = sshll.u32 %s692_s30, 4  ;;  %s2629_s27 = int_to_ptr.vmem [resolvable:$true] %s2628_s27 }
 0x533   : > { %s2626_s10 = scalar_lea.hbm %s3923_s9, %s2814_s22  ;;  %s2615_s28 = scalar_lea.sflag [#allocation12], %s690_s0 }
 0x534   : > { %s3107_s25 = scalar_lea.vmem %s2629_s27, 128  ;;  %s3223_s18 = smov [#allocation11]  }
 0x535   : > { %p3108_p5 = scmp.ne.s32.totalorder %s2629_s27, %s3107_s25  ;;  %s3111_s24 = sshll.u32 %s3223_s18, 4  ;;  %s3112_s24 = int_to_ptr.vmem [resolvable:$false] %s3111_s24 }
 0x536   : > { %s3113_s11 = scalar_lea.vmem %s3112_s24, 256  ;;  %p3114_p9 = scmp.lt.s32.totalorder %s2629_s27, %s3112_s24 }
 0x537   : > { %p3109_p6 = pnand %p3108_p5, %p3352_p7  ;;  %p3115_p10 = scmp.lt.s32.totalorder %s3113_s11, %s3107_s25 }
 0x539   : > { %p3110_p8 = pneg %p3109_p6  ;;  %p3116_p11 = por %p3115_p10, %p3114_p9 }
 0x53b   : > { %p3117_p13 = pnand %p3116_p11, %p3110_p8 }
 0x53d   : > { %3120 = shalt.err (!%p3117_p13)
}
 0x53e   : > { %s3121_s19 = scalar_lea.hbm %s2626_s10, 128  ;;  %s3125_s30 = scalar_lea.hbm %s3923_s9, 256 }
 0x53f   : > { %p3122_p0 = scmp.ne.s32.totalorder %s2626_s10, %s3121_s19  ;;  %p3126_p3 = scmp.lt.s32.totalorder %s2626_s10, %s3923_s9 }
 0x540   : > { %p3127_p4 = scmp.lt.s32.totalorder %s3125_s30, %s3121_s19 }
 0x541   : > { %p3123_p1 = pnand %p3122_p0, %p3352_p7 }
 0x542   : > { %p3128_p5 = por %p3127_p4, %p3126_p3 }
 0x543   : > { %p3124_p2 = pneg %p3123_p1 }
 0x545   : > { %p3129_p6 = pnand %p3128_p5, %p3124_p2 }
 0x547   : > { %3132 = shalt.err (!%p3129_p6)
}
 0x548   : > { %2971 = dma.vmem_to_hbm [thread:$0]  (%p3352_p7), %s2629_s27, 128, %s2626_s10, %s2615_s28  }
 0x549 PF: > { %p2977_p8 = scmp.ge.s32.totalorder %s3215_s8, 2  ;;  %s2640_s25 = sand.u32 1, %s3179_s13  }
 0x54a   : > { %s2641_s18 = scalar_lea.sflag [#allocation12], %s2640_s25 }
 0x54b   : > { %p2974_p9 = pnand %p2977_p8, %p3360_p12 }
 0x54d   : > { %p2975_p10 = pneg %p2974_p9 }
 0x54f   : > { %3174 = dma.done.wait (%p2975_p10), %s2641_s18, 128  }
 0x550   : > { %3176 = vsyncadd (%p2975_p10), %s2641_s18, 4294967168  ;;  %s24_s8 = sadd.s32 1, %s3215_s8   ;;  %s3955_s29 = sld [smem:[#allocation14_spill]] }
 0x551   : > { %p21_p11 = scmp.ge.s32.totalorder %s24_s8, 6   ;;  %s3956_s10 = sld [smem:[#allocation15_spill]] }
 0x552   : > { %s3957_s13 = smov %s3183_s14  ;;  %s3958_s14 = smov %s3187_s15 }
 0x553   : > { %s3959_s15 = smov %s3365_s12  ;;  %s3960_s16 = smov %s3195_s17 }
 0x554   : > { %s3961_s17 = smov %s3368_s21  ;;  %s3962_s18 = smov %s3207_s7 }
 0x555   : > { %s3963_s19 = smov %s3211_s20  ;;  %23 = sbr.rel (!%p21_p11) target bundleno = 10 (0xa), region = 289 }
 0x556   : > { %s3964_s7 = smov %s3955_s29 }
 0x557   : > { %s3965_s20 = smov %s3956_s10 }
 0x55a   :  { %2646 = vsyncpa [#allocation12], 1 }
 0x55b   :  { %2648 = vsyncpa [#allocation12 + $0x1], 1 }

</bundles_post_ra>
